<compile_context>
chip_gen: v5e
topology: v5e:2x2
jax: 0.10.0
libtpu: 0.0.40
codegen_flags: <defaults>
</compile_context>

<pallas_src>
import math

import jax
import jax.numpy as jnp
from jax.experimental import pallas as pl
from jax.experimental.pallas import tpu as pltpu

# ---------------- synthetic BERT config (small) ----------------
VOCAB_SIZE = 100
EMB_SIZE = 32
MAX_SEQ_LEN = 16
N_LAYERS = 2
N_HEADS = (2, 2)                 # per-layer head counts (config.n_heads[layer_i])
INTERMEDIATE_SIZE = 64
LN_EPS = 1e-12
PAD_TOKEN_ID = 0
DROPOUT = 0.0                    # identity dropout

BATCH = 2
SEQ = 8

MASK_NEG = -1e30                 # finite "minus infinity" for the additive key mask


# ---------------- in-kernel helpers ----------------
def _layernorm(x, gamma, beta):
    # x: (rows, C), gamma/beta: (1, C)
    mu = jnp.mean(x, axis=-1, keepdims=True)
    var = jnp.mean(jnp.square(x - mu), axis=-1, keepdims=True)
    return (x - mu) * jax.lax.rsqrt(var + LN_EPS) * gamma + beta


def _gelu_exact(x):
    # exact (erf-based) GELU, matching torch.nn.GELU() default
    return 0.5 * x * (1.0 + jax.lax.erf(x * (1.0 / math.sqrt(2.0))))


# ---------------- fused Pallas kernel (grid over layers) ----------------
def make_fused_kernel(B, T, C, H, I, L):
    D = C // H
    scale = 1.0 / math.sqrt(D)
    BT = B * T

    def kernel(emb_ref, eg_ref, eb_ref, bias_ref,
               wqkv_ref, bqkv_ref, wao_ref, bao_ref, g1_ref, b1_ref,
               wi_ref, bi_ref, wo_ref, bo_ref, g2_ref, b2_ref,
               pw_ref, pb_ref,
               enc_ref, pool_ref,
               x_scr):
        l = pl.program_id(0)

        # ---- BertEmbeddings: (summed gathers) + LayerNorm, only at layer 0 ----
        @pl.when(l == 0)
        def _():
            x_scr[...] = _layernorm(emb_ref[...], eg_ref[...], eb_ref[...])

        x = x_scr[...]                                                   # (B*T, C)

        # ---- fused QKV projection: one matmul with 3C output lanes ----
        qkv = jnp.dot(x, wqkv_ref[...],
                      preferred_element_type=jnp.float32) + bqkv_ref[...]
        q = qkv[:, 0 * C:1 * C]
        k = qkv[:, 1 * C:2 * C]
        v = qkv[:, 2 * C:3 * C]

        bias = bias_ref[...]                                             # (B, 1, T) additive key mask

        # ---- multi-head attention, batched over B via 3-D contractions ----
        heads = []
        for h in range(H):                                               # static unroll (H small)
            qh = q[:, h * D:(h + 1) * D].reshape(B, T, D)
            kh = k[:, h * D:(h + 1) * D].reshape(B, T, D)
            vh = v[:, h * D:(h + 1) * D].reshape(B, T, D)
            s = jnp.einsum('bqd,bkd->bqk', qh, kh,
                           preferred_element_type=jnp.float32) * scale   # (B, T, T)
            s = s + bias                                                 # mask pad keys
            s = s - jnp.max(s, axis=-1, keepdims=True)
            p = jnp.exp(s)
            p = p * pl.reciprocal(jnp.sum(p, axis=-1, keepdims=True), approx=True)
            ctx = jnp.einsum('bqk,bkd->bqd', p, vh,
                             preferred_element_type=jnp.float32)         # (B, T, D)
            heads.append(ctx.reshape(BT, D))
        attn = jnp.concatenate(heads, axis=-1)                           # (B*T, C)

        # ---- BertSelfOutput: dense + residual + LayerNorm ----
        ao = jnp.dot(attn, wao_ref[...],
                     preferred_element_type=jnp.float32) + bao_ref[...]
        h1 = _layernorm(ao + x, g1_ref[...], b1_ref[...])

        # ---- BertIntermediate: dense + exact GELU ----
        inter = _gelu_exact(
            jnp.dot(h1, wi_ref[...], preferred_element_type=jnp.float32) + bi_ref[...])

        # ---- BertOutput: dense + residual + LayerNorm ----
        o = jnp.dot(inter, wo_ref[...],
                    preferred_element_type=jnp.float32) + bo_ref[...]
        x_new = _layernorm(o + h1, g2_ref[...], b2_ref[...])
        x_scr[...] = x_new                                               # carry to next layer

        # ---- last layer: emit encoder output + BertPooler ----
        @pl.when(l == L - 1)
        def _():
            enc_ref[...] = x_new
            first = jnp.concatenate(
                [x_new[b * T:b * T + 1, :] for b in range(B)], axis=0)   # (B, C), first token per seq
            pool_ref[...] = jnp.tanh(
                jnp.dot(first, pw_ref[...],
                        preferred_element_type=jnp.float32) + pb_ref[...])

    return kernel


# ---------------- parameter init (deterministic, synthetic) ----------------
def init_params(key):
    def normal(key, shape, std=0.02):
        return std * jax.random.normal(key, shape, dtype=jnp.float32)

    keys = iter(jax.random.split(key, 256))
    p = {}
    word = normal(next(keys), (VOCAB_SIZE, EMB_SIZE))
    word = word.at[PAD_TOKEN_ID].set(0.0)            # padding_idx row zeroed
    p["word_emb"] = word
    p["pos_emb"] = normal(next(keys), (MAX_SEQ_LEN, EMB_SIZE))
    p["tok_emb"] = normal(next(keys), (2, EMB_SIZE))
    p["emb_ln_g"] = jnp.ones((1, EMB_SIZE), jnp.float32)
    p["emb_ln_b"] = jnp.zeros((1, EMB_SIZE), jnp.float32)

    layers = []
    for _ in range(N_LAYERS):
        lp = {
            "wq": normal(next(keys), (EMB_SIZE, EMB_SIZE)),
            "bq": normal(next(keys), (1, EMB_SIZE)),
            "wk": normal(next(keys), (EMB_SIZE, EMB_SIZE)),
            "bk": normal(next(keys), (1, EMB_SIZE)),
            "wv": normal(next(keys), (EMB_SIZE, EMB_SIZE)),
            "bv": normal(next(keys), (1, EMB_SIZE)),
            "wao": normal(next(keys), (EMB_SIZE, EMB_SIZE)),
            "bao": normal(next(keys), (1, EMB_SIZE)),
            "ln1_g": jnp.ones((1, EMB_SIZE), jnp.float32),
            "ln1_b": jnp.zeros((1, EMB_SIZE), jnp.float32),
            "wi": normal(next(keys), (EMB_SIZE, INTERMEDIATE_SIZE)),
            "bi": normal(next(keys), (1, INTERMEDIATE_SIZE)),
            "wo": normal(next(keys), (INTERMEDIATE_SIZE, EMB_SIZE)),
            "bo": normal(next(keys), (1, EMB_SIZE)),
            "ln2_g": jnp.ones((1, EMB_SIZE), jnp.float32),
            "ln2_b": jnp.zeros((1, EMB_SIZE), jnp.float32),
        }
        layers.append(lp)
    p["layers"] = layers

    p["pool_w"] = normal(next(keys), (EMB_SIZE, EMB_SIZE))
    p["pool_b"] = normal(next(keys), (1, EMB_SIZE))
    return p


# ---------------- full model (one fused pallas_call) ----------------
def bert_model(params, input_ids, token_type_ids, att_mask):
    B, T = input_ids.shape
    C = EMB_SIZE
    I = INTERMEDIATE_SIZE
    L = N_LAYERS
    H = N_HEADS[0]
    assert all(h == H for h in N_HEADS), "fused layer-grid kernel requires equal head counts"
    assert C % H == 0

    # ---- embedding gathers (plain JAX glue) and their sum ----
    we = jnp.take(params["word_emb"], input_ids, axis=0)                 # (B, T, C)
    te = jnp.take(params["tok_emb"], token_type_ids, axis=0)             # (B, T, C)
    pe = jnp.take(params["pos_emb"], jnp.arange(T), axis=0)[None]        # (1, T, C)
    emb_sum = (we + te + pe).reshape(B * T, C).astype(jnp.float32)

    # ---- additive key mask: 0 where attended, -1e30 where padded ----
    bias = ((att_mask.astype(jnp.float32) - 1.0) * (-MASK_NEG * 0 + 1e30)).reshape(B, 1, T)
    bias = jnp.where(att_mask.reshape(B, 1, T) > 0, 0.0, MASK_NEG).astype(jnp.float32)

    # ---- stack per-layer weights along a leading layer axis ----
    layers = params["layers"]
    stack = lambda name: jnp.stack([lp[name] for lp in layers])
    wqkv = jnp.stack([jnp.concatenate([lp["wq"], lp["wk"], lp["wv"]], axis=1) for lp in layers])
    bqkv = jnp.stack([jnp.concatenate([lp["bq"], lp["bk"], lp["bv"]], axis=1) for lp in layers])
    wao, bao = stack("wao"), stack("bao")
    g1, b1 = stack("ln1_g"), stack("ln1_b")
    wi, bi = stack("wi"), stack("bi")
    wo, bo = stack("wo"), stack("bo")
    g2, b2 = stack("ln2_g"), stack("ln2_b")

    def full_spec(shape):                      # whole array, same block every iteration
        zeros = (0,) * len(shape)
        return pl.BlockSpec(shape, lambda l, _z=zeros: _z)

    def layer_spec(shape):                     # per-layer slice of a (L, ...) stack
        zeros = (0,) * len(shape)
        return pl.BlockSpec((None,) + tuple(shape), lambda l, _z=zeros: (l,) + _z)

    grid_spec = pltpu.PrefetchScalarGridSpec(
        num_scalar_prefetch=0,
        grid=(L,),
        in_specs=[
            full_spec((B * T, C)),       # summed embeddings
            full_spec((1, C)),           # emb LN gamma
            full_spec((1, C)),           # emb LN beta
            full_spec((B, 1, T)),        # additive key mask
            layer_spec((C, 3 * C)),      # wqkv
            layer_spec((1, 3 * C)),      # bqkv
            layer_spec((C, C)),          # wao
            layer_spec((1, C)),          # bao
            layer_spec((1, C)),          # ln1 gamma
            layer_spec((1, C)),          # ln1 beta
            layer_spec((C, I)),          # wi
            layer_spec((1, I)),          # bi
            layer_spec((I, C)),          # wo
            layer_spec((1, C)),          # bo
            layer_spec((1, C)),          # ln2 gamma
            layer_spec((1, C)),          # ln2 beta
            full_spec((C, C)),           # pooler W
            full_spec((1, C)),           # pooler b
        ],
        out_specs=[
            full_spec((B * T, C)),       # encoder output (resident across layer axis)
            full_spec((B, C)),           # pooled output
        ],
        scratch_shapes=[pltpu.VMEM((B * T, C), jnp.float32)],   # persistent activation
    )

    # advisory cost estimate for the XLA scheduler
    flops_layer = 2 * B * T * (4 * C * C + 2 * T * C + 2 * C * I)
    flops = L * flops_layer + 2 * B * C * C
    transcendentals = L * (B * H * T * T + B * T * I + 2 * B * T + B * H * T) + B * C
    in_arrays = [emb_sum, params["emb_ln_g"], params["emb_ln_b"], bias,
                 wqkv, bqkv, wao, bao, g1, b1, wi, bi, wo, bo, g2, b2,
                 params["pool_w"], params["pool_b"]]
    bytes_accessed = sum(int(a.size) * a.dtype.itemsize for a in in_arrays) \
        + (B * T * C + B * C) * 4

    enc2d, pooled = pl.pallas_call(
        make_fused_kernel(B, T, C, H, I, L),
        out_shape=(jax.ShapeDtypeStruct((B * T, C), jnp.float32),
                   jax.ShapeDtypeStruct((B, C), jnp.float32)),
        grid_spec=grid_spec,
        compiler_params=pltpu.CompilerParams(dimension_semantics=("arbitrary",)),
        cost_estimate=pl.CostEstimate(flops=flops,
                                      transcendentals=transcendentals,
                                      bytes_accessed=bytes_accessed),
    )(emb_sum, params["emb_ln_g"], params["emb_ln_b"], bias,
      wqkv, bqkv, wao, bao, g1, b1, wi, bi, wo, bo, g2, b2,
      params["pool_w"], params["pool_b"])

    return enc2d.reshape(B, T, C), pooled


if __name__ == "__main__":
    key = jax.random.PRNGKey(0)
    pkey, ikey, tkey = jax.random.split(key, 3)

    params = init_params(pkey)

    input_ids = jax.random.randint(ikey, (BATCH, SEQ), 1, VOCAB_SIZE, dtype=jnp.int32)
    token_type_ids = jax.random.randint(tkey, (BATCH, SEQ), 0, 2, dtype=jnp.int32)
    # second sequence has the last 3 positions padded / masked out
    att_mask = jnp.array([[1] * SEQ,
                          [1] * (SEQ - 3) + [0] * 3], dtype=jnp.int32)
    input_ids = jnp.where(att_mask > 0, input_ids, PAD_TOKEN_ID)

    fwd = jax.jit(bert_model)
    encoder_out, pooled_out = fwd(params, input_ids, token_type_ids, att_mask)
    jax.block_until_ready((encoder_out, pooled_out))

    assert encoder_out.shape == (BATCH, SEQ, EMB_SIZE)
    assert pooled_out.shape == (BATCH, EMB_SIZE)
    assert bool(jnp.all(jnp.isfinite(encoder_out))) and bool(jnp.all(jnp.isfinite(pooled_out)))
    print("KERNEL_OK")
</pallas_src>

<mosaic_0001>
module attributes {stable_mosaic.version = 11 : i64} {
  func.func @kernel(%arg0: i32, %arg1: memref<16x32xf32, #tpu.memory_space<vmem>>, %arg2: memref<1x32xf32, #tpu.memory_space<vmem>>, %arg3: memref<1x32xf32, #tpu.memory_space<vmem>>, %arg4: memref<2x1x8xf32, #tpu.memory_space<vmem>>, %arg5: memref<1x32x96xf32, #tpu.memory_space<vmem>>, %arg6: memref<1x1x96xf32, #tpu.memory_space<vmem>>, %arg7: memref<1x32x32xf32, #tpu.memory_space<vmem>>, %arg8: memref<1x1x32xf32, #tpu.memory_space<vmem>>, %arg9: memref<1x1x32xf32, #tpu.memory_space<vmem>>, %arg10: memref<1x1x32xf32, #tpu.memory_space<vmem>>, %arg11: memref<1x32x64xf32, #tpu.memory_space<vmem>>, %arg12: memref<1x1x64xf32, #tpu.memory_space<vmem>>, %arg13: memref<1x64x32xf32, #tpu.memory_space<vmem>>, %arg14: memref<1x1x32xf32, #tpu.memory_space<vmem>>, %arg15: memref<1x1x32xf32, #tpu.memory_space<vmem>>, %arg16: memref<1x1x32xf32, #tpu.memory_space<vmem>>, %arg17: memref<32x32xf32, #tpu.memory_space<vmem>>, %arg18: memref<1x32xf32, #tpu.memory_space<vmem>>, %arg19: memref<16x32xf32, #tpu.memory_space<vmem>>, %arg20: memref<2x32xf32, #tpu.memory_space<vmem>>, %arg21: memref<16x32xf32, #tpu.memory_space<vmem>>) attributes {dimension_semantics = [#tpu.dimension_semantics<arbitrary>], iteration_bounds = array<i64: 2>, scalar_prefetch = 0 : i64, scratch_operands = 1 : i64, tpu.core_type = #tpu.core_type<tc>, window_params = [{pipeline_mode = #tpu.pipeline_mode<synchronous>, transform_indices = @transform_0, window_bounds = array<i64: 16, 32>}, {pipeline_mode = #tpu.pipeline_mode<synchronous>, transform_indices = @transform_1, window_bounds = array<i64: 1, 32>}, {pipeline_mode = #tpu.pipeline_mode<synchronous>, transform_indices = @transform_2, window_bounds = array<i64: 1, 32>}, {pipeline_mode = #tpu.pipeline_mode<synchronous>, transform_indices = @transform_3, window_bounds = array<i64: 2, 1, 8>}, {transform_indices = @transform_4, window_bounds = array<i64: 1, 32, 96>}, {transform_indices = @transform_5, window_bounds = array<i64: 1, 1, 96>}, {transform_indices = @transform_6, window_bounds = array<i64: 1, 32, 32>}, {transform_indices = @transform_7, window_bounds = array<i64: 1, 1, 32>}, {transform_indices = @transform_8, window_bounds = array<i64: 1, 1, 32>}, {transform_indices = @transform_9, window_bounds = array<i64: 1, 1, 32>}, {transform_indices = @transform_10, window_bounds = array<i64: 1, 32, 64>}, {transform_indices = @transform_11, window_bounds = array<i64: 1, 1, 64>}, {transform_indices = @transform_12, window_bounds = array<i64: 1, 64, 32>}, {transform_indices = @transform_13, window_bounds = array<i64: 1, 1, 32>}, {transform_indices = @transform_14, window_bounds = array<i64: 1, 1, 32>}, {transform_indices = @transform_15, window_bounds = array<i64: 1, 1, 32>}, {pipeline_mode = #tpu.pipeline_mode<synchronous>, transform_indices = @transform_16, window_bounds = array<i64: 32, 32>}, {pipeline_mode = #tpu.pipeline_mode<synchronous>, transform_indices = @transform_17, window_bounds = array<i64: 1, 32>}, {pipeline_mode = #tpu.pipeline_mode<synchronous>, transform_indices = @transform_18, window_bounds = array<i64: 16, 32>}, {pipeline_mode = #tpu.pipeline_mode<synchronous>, transform_indices = @transform_19, window_bounds = array<i64: 2, 32>}]} {
    %c0_i32 = arith.constant 0 : i32
    %0 = arith.cmpi eq, %arg0, %c0_i32 : i32
    %1 = arith.extui %0 : i1 to i32
    %c0_i32_0 = arith.constant 0 : i32
    %2 = arith.cmpi ne, %1, %c0_i32_0 : i32
    scf.if %2 {
      %c0_70 = arith.constant 0 : index
      %c0_71 = arith.constant 0 : index
      %149 = vector.load %arg1[%c0_70, %c0_71] : memref<16x32xf32, #tpu.memory_space<vmem>>, vector<16x32xf32>
      %c0_72 = arith.constant 0 : index
      %c0_73 = arith.constant 0 : index
      %150 = vector.load %arg2[%c0_72, %c0_73] : memref<1x32xf32, #tpu.memory_space<vmem>>, vector<1x32xf32>
      %c0_74 = arith.constant 0 : index
      %c0_75 = arith.constant 0 : index
      %151 = vector.load %arg3[%c0_74, %c0_75] : memref<1x32xf32, #tpu.memory_space<vmem>>, vector<1x32xf32>
      %cst_76 = arith.constant dense<0.000000e+00> : vector<16xf32>
      %152 = vector.multi_reduction <add>, %149, %cst_76 [1] : vector<16x32xf32> to vector<16xf32>
      %153 = vector.shape_cast %152 : vector<16xf32> to vector<16x1xf32>
      %cst_77 = arith.constant 3.200000e+01 : f32
      %154 = vector.broadcast %cst_77 : f32 to vector<16x1xf32>
      %155 = arith.divf %153, %154 : vector<16x1xf32>
      %156 = vector.broadcast %155 : vector<16x1xf32> to vector<16x32xf32>
      %157 = arith.subf %149, %156 : vector<16x32xf32>
      %158 = arith.mulf %157, %157 : vector<16x32xf32>
      %cst_78 = arith.constant dense<0.000000e+00> : vector<16xf32>
      %159 = vector.multi_reduction <add>, %158, %cst_78 [1] : vector<16x32xf32> to vector<16xf32>
      %160 = vector.shape_cast %159 : vector<16xf32> to vector<16x1xf32>
      %cst_79 = arith.constant 3.200000e+01 : f32
      %161 = vector.broadcast %cst_79 : f32 to vector<16x1xf32>
      %162 = arith.divf %160, %161 : vector<16x1xf32>
      %163 = vector.broadcast %155 : vector<16x1xf32> to vector<16x32xf32>
      %164 = arith.subf %149, %163 : vector<16x32xf32>
      %cst_80 = arith.constant 9.99999996E-13 : f32
      %165 = vector.broadcast %cst_80 : f32 to vector<16x1xf32>
      %166 = arith.addf %162, %165 : vector<16x1xf32>
      %167 = math.rsqrt %166 : vector<16x1xf32>
      %168 = vector.broadcast %167 : vector<16x1xf32> to vector<16x32xf32>
      %169 = arith.mulf %164, %168 : vector<16x32xf32>
      %170 = vector.broadcast %150 : vector<1x32xf32> to vector<16x32xf32>
      %171 = arith.mulf %169, %170 : vector<16x32xf32>
      %172 = vector.broadcast %151 : vector<1x32xf32> to vector<16x32xf32>
      %173 = arith.addf %171, %172 : vector<16x32xf32>
      %c0_81 = arith.constant 0 : index
      %c0_82 = arith.constant 0 : index
      %174 = vector.load %arg21[%c0_81, %c0_82] : memref<16x32xf32, #tpu.memory_space<vmem>>, vector<16x32xf32>
      tpu.vector_store %arg21[%c0_81, %c0_82], %173 {strides = array<i32>} : memref<16x32xf32, #tpu.memory_space<vmem>>, vector<16x32xf32>,
    } else {
    }
    %c0 = arith.constant 0 : index
    %c0_1 = arith.constant 0 : index
    %3 = vector.load %arg21[%c0, %c0_1] : memref<16x32xf32, #tpu.memory_space<vmem>>, vector<16x32xf32>
    %c0_2 = arith.constant 0 : index
    %c0_3 = arith.constant 0 : index
    %c0_4 = arith.constant 0 : index
    %4 = vector.load %arg5[%c0_2, %c0_3, %c0_4] : memref<1x32x96xf32, #tpu.memory_space<vmem>>, vector<1x32x96xf32>
    %5 = vector.shape_cast %4 : vector<1x32x96xf32> to vector<32x96xf32>
    %cst = arith.constant dense<0.000000e+00> : vector<16x96xf32>
    %6 = tpu.matmul %3, %5, %cst {dimension_numbers = #tpu.dot_dimension_numbers<[1], [0], [0], [1], [0, 0, 1, 1], [], []>} : vector<16x32xf32>, vector<32x96xf32>, vector<16x96xf32> -> vector<16x96xf32>
    %c0_5 = arith.constant 0 : index
    %c0_6 = arith.constant 0 : index
    %c0_7 = arith.constant 0 : index
    %7 = vector.load %arg6[%c0_5, %c0_6, %c0_7] : memref<1x1x96xf32, #tpu.memory_space<vmem>>, vector<1x1x96xf32>
    %8 = vector.shape_cast %7 : vector<1x1x96xf32> to vector<1x96xf32>
    %9 = vector.broadcast %8 : vector<1x96xf32> to vector<16x96xf32>
    %10 = arith.addf %6, %9 : vector<16x96xf32>
    %11 = vector.extract_strided_slice %10 {offsets = [0, 0], sizes = [16, 32], strides = [1, 1]} : vector<16x96xf32> to vector<16x32xf32>
    %12 = vector.extract_strided_slice %10 {offsets = [0, 32], sizes = [16, 32], strides = [1, 1]} : vector<16x96xf32> to vector<16x32xf32>
    %13 = vector.extract_strided_slice %10 {offsets = [0, 64], sizes = [16, 32], strides = [1, 1]} : vector<16x96xf32> to vector<16x32xf32>
    %c0_8 = arith.constant 0 : index
    %c0_9 = arith.constant 0 : index
    %c0_10 = arith.constant 0 : index
    %14 = vector.load %arg4[%c0_8, %c0_9, %c0_10] : memref<2x1x8xf32, #tpu.memory_space<vmem>>, vector<2x1x8xf32>
    %15 = vector.extract_strided_slice %11 {offsets = [0, 0], sizes = [16, 16], strides = [1, 1]} : vector<16x32xf32> to vector<16x16xf32>
    %16 = vector.shape_cast %15 : vector<16x16xf32> to vector<2x8x16xf32>
    %17 = vector.extract_strided_slice %12 {offsets = [0, 0], sizes = [16, 16], strides = [1, 1]} : vector<16x32xf32> to vector<16x16xf32>
    %18 = vector.shape_cast %17 : vector<16x16xf32> to vector<2x8x16xf32>
    %19 = vector.extract_strided_slice %13 {offsets = [0, 0], sizes = [16, 16], strides = [1, 1]} : vector<16x32xf32> to vector<16x16xf32>
    %20 = vector.shape_cast %19 : vector<16x16xf32> to vector<2x8x16xf32>
    "tpu.trace_start"() <{level = 10 : i32, message = "bqd,bkd->bqk"}> : () -> ()
    %cst_11 = arith.constant dense<0.000000e+00> : vector<2x8x8xf32>
    %21 = tpu.matmul %16, %18, %cst_11 {dimension_numbers = #tpu.dot_dimension_numbers<[2], [2], [1], [1], [0, 0, 0, 1, 1, 1], [0], [0]>} : vector<2x8x16xf32>, vector<2x8x16xf32>, vector<2x8x8xf32> -> vector<2x8x8xf32>
    "tpu.trace_stop"() : () -> ()
    %cst_12 = arith.constant 2.500000e-01 : f32
    %22 = vector.broadcast %cst_12 : f32 to vector<2x8x8xf32>
    %23 = arith.mulf %21, %22 : vector<2x8x8xf32>
    %24 = vector.broadcast %14 : vector<2x1x8xf32> to vector<2x8x8xf32>
    %25 = arith.addf %23, %24 : vector<2x8x8xf32>
    %cst_13 = arith.constant dense<0xFF800000> : vector<2x8xf32>
    %26 = vector.multi_reduction <maximumf>, %25, %cst_13 [2] : vector<2x8x8xf32> to vector<2x8xf32>
    %27 = vector.shape_cast %26 : vector<2x8xf32> to vector<2x8x1xf32>
    %28 = vector.broadcast %27 : vector<2x8x1xf32> to vector<2x8x8xf32>
    %29 = arith.subf %25, %28 : vector<2x8x8xf32>
    %30 = math.exp %29 : vector<2x8x8xf32>
    %cst_14 = arith.constant dense<0.000000e+00> : vector<2x8xf32>
    %31 = vector.multi_reduction <add>, %30, %cst_14 [2] : vector<2x8x8xf32> to vector<2x8xf32>
    %32 = vector.shape_cast %31 : vector<2x8xf32> to vector<2x8x1xf32>
    %33 = tpu.reciprocal %32 {approx = true} : vector<2x8x1xf32> -> vector<2x8x1xf32>
    %34 = vector.broadcast %33 : vector<2x8x1xf32> to vector<2x8x8xf32>
    %35 = arith.mulf %30, %34 : vector<2x8x8xf32>
    "tpu.trace_start"() <{level = 10 : i32, message = "bqk,bkd->bqd"}> : () -> ()
    %cst_15 = arith.constant dense<0.000000e+00> : vector<2x8x16xf32>
    %36 = tpu.matmul %35, %20, %cst_15 {dimension_numbers = #tpu.dot_dimension_numbers<[2], [1], [1], [2], [0, 0, 0, 1, 1, 2], [0], [0]>} : vector<2x8x8xf32>, vector<2x8x16xf32>, vector<2x8x16xf32> -> vector<2x8x16xf32>
    "tpu.trace_stop"() : () -> ()
    %37 = vector.shape_cast %36 : vector<2x8x16xf32> to vector<16x16xf32>
    %38 = vector.extract_strided_slice %11 {offsets = [0, 16], sizes = [16, 16], strides = [1, 1]} : vector<16x32xf32> to vector<16x16xf32>
    %39 = vector.shape_cast %38 : vector<16x16xf32> to vector<2x8x16xf32>
    %40 = vector.extract_strided_slice %12 {offsets = [0, 16], sizes = [16, 16], strides = [1, 1]} : vector<16x32xf32> to vector<16x16xf32>
    %41 = vector.shape_cast %40 : vector<16x16xf32> to vector<2x8x16xf32>
    %42 = vector.extract_strided_slice %13 {offsets = [0, 16], sizes = [16, 16], strides = [1, 1]} : vector<16x32xf32> to vector<16x16xf32>
    %43 = vector.shape_cast %42 : vector<16x16xf32> to vector<2x8x16xf32>
    "tpu.trace_start"() <{level = 10 : i32, message = "bqd,bkd->bqk"}> : () -> ()
    %cst_16 = arith.constant dense<0.000000e+00> : vector<2x8x8xf32>
    %44 = tpu.matmul %39, %41, %cst_16 {dimension_numbers = #tpu.dot_dimension_numbers<[2], [2], [1], [1], [0, 0, 0, 1, 1, 1], [0], [0]>} : vector<2x8x16xf32>, vector<2x8x16xf32>, vector<2x8x8xf32> -> vector<2x8x8xf32>
    "tpu.trace_stop"() : () -> ()
    %cst_17 = arith.constant 2.500000e-01 : f32
    %45 = vector.broadcast %cst_17 : f32 to vector<2x8x8xf32>
    %46 = arith.mulf %44, %45 : vector<2x8x8xf32>
    %47 = vector.broadcast %14 : vector<2x1x8xf32> to vector<2x8x8xf32>
    %48 = arith.addf %46, %47 : vector<2x8x8xf32>
    %cst_18 = arith.constant dense<0xFF800000> : vector<2x8xf32>
    %49 = vector.multi_reduction <maximumf>, %48, %cst_18 [2] : vector<2x8x8xf32> to vector<2x8xf32>
    %50 = vector.shape_cast %49 : vector<2x8xf32> to vector<2x8x1xf32>
    %51 = vector.broadcast %50 : vector<2x8x1xf32> to vector<2x8x8xf32>
    %52 = arith.subf %48, %51 : vector<2x8x8xf32>
    %53 = math.exp %52 : vector<2x8x8xf32>
    %cst_19 = arith.constant dense<0.000000e+00> : vector<2x8xf32>
    %54 = vector.multi_reduction <add>, %53, %cst_19 [2] : vector<2x8x8xf32> to vector<2x8xf32>
    %55 = vector.shape_cast %54 : vector<2x8xf32> to vector<2x8x1xf32>
    %56 = tpu.reciprocal %55 {approx = true} : vector<2x8x1xf32> -> vector<2x8x1xf32>
    %57 = vector.broadcast %56 : vector<2x8x1xf32> to vector<2x8x8xf32>
    %58 = arith.mulf %53, %57 : vector<2x8x8xf32>
    "tpu.trace_start"() <{level = 10 : i32, message = "bqk,bkd->bqd"}> : () -> ()
    %cst_20 = arith.constant dense<0.000000e+00> : vector<2x8x16xf32>
    %59 = tpu.matmul %58, %43, %cst_20 {dimension_numbers = #tpu.dot_dimension_numbers<[2], [1], [1], [2], [0, 0, 0, 1, 1, 2], [0], [0]>} : vector<2x8x8xf32>, vector<2x8x16xf32>, vector<2x8x16xf32> -> vector<2x8x16xf32>
    "tpu.trace_stop"() : () -> ()
    %60 = vector.shape_cast %59 : vector<2x8x16xf32> to vector<16x16xf32>
    %61 = tpu.concatenate %37, %60 in 1 : vector<16x16xf32>, vector<16x16xf32> -> vector<16x32xf32>
    %c0_21 = arith.constant 0 : index
    %c0_22 = arith.constant 0 : index
    %c0_23 = arith.constant 0 : index
    %62 = vector.load %arg7[%c0_21, %c0_22, %c0_23] : memref<1x32x32xf32, #tpu.memory_space<vmem>>, vector<1x32x32xf32>
    %63 = vector.shape_cast %62 : vector<1x32x32xf32> to vector<32x32xf32>
    %cst_24 = arith.constant dense<0.000000e+00> : vector<16x32xf32>
    %64 = tpu.matmul %61, %63, %cst_24 {dimension_numbers = #tpu.dot_dimension_numbers<[1], [0], [0], [1], [0, 0, 1, 1], [], []>} : vector<16x32xf32>, vector<32x32xf32>, vector<16x32xf32> -> vector<16x32xf32>
    %c0_25 = arith.constant 0 : index
    %c0_26 = arith.constant 0 : index
    %c0_27 = arith.constant 0 : index
    %65 = vector.load %arg8[%c0_25, %c0_26, %c0_27] : memref<1x1x32xf32, #tpu.memory_space<vmem>>, vector<1x1x32xf32>
    %66 = vector.shape_cast %65 : vector<1x1x32xf32> to vector<1x32xf32>
    %67 = vector.broadcast %66 : vector<1x32xf32> to vector<16x32xf32>
    %68 = arith.addf %64, %67 : vector<16x32xf32>
    %69 = arith.addf %68, %3 : vector<16x32xf32>
    %c0_28 = arith.constant 0 : index
    %c0_29 = arith.constant 0 : index
    %c0_30 = arith.constant 0 : index
    %70 = vector.load %arg9[%c0_28, %c0_29, %c0_30] : memref<1x1x32xf32, #tpu.memory_space<vmem>>, vector<1x1x32xf32>
    %71 = vector.shape_cast %70 : vector<1x1x32xf32> to vector<1x32xf32>
    %c0_31 = arith.constant 0 : index
    %c0_32 = arith.constant 0 : index
    %c0_33 = arith.constant 0 : index
    %72 = vector.load %arg10[%c0_31, %c0_32, %c0_33] : memref<1x1x32xf32, #tpu.memory_space<vmem>>, vector<1x1x32xf32>
    %73 = vector.shape_cast %72 : vector<1x1x32xf32> to vector<1x32xf32>
    %cst_34 = arith.constant dense<0.000000e+00> : vector<16xf32>
    %74 = vector.multi_reduction <add>, %69, %cst_34 [1] : vector<16x32xf32> to vector<16xf32>
    %75 = vector.shape_cast %74 : vector<16xf32> to vector<16x1xf32>
    %cst_35 = arith.constant 3.200000e+01 : f32
    %76 = vector.broadcast %cst_35 : f32 to vector<16x1xf32>
    %77 = arith.divf %75, %76 : vector<16x1xf32>
    %78 = vector.broadcast %77 : vector<16x1xf32> to vector<16x32xf32>
    %79 = arith.subf %69, %78 : vector<16x32xf32>
    %80 = arith.mulf %79, %79 : vector<16x32xf32>
    %cst_36 = arith.constant dense<0.000000e+00> : vector<16xf32>
    %81 = vector.multi_reduction <add>, %80, %cst_36 [1] : vector<16x32xf32> to vector<16xf32>
    %82 = vector.shape_cast %81 : vector<16xf32> to vector<16x1xf32>
    %cst_37 = arith.constant 3.200000e+01 : f32
    %83 = vector.broadcast %cst_37 : f32 to vector<16x1xf32>
    %84 = arith.divf %82, %83 : vector<16x1xf32>
    %85 = vector.broadcast %77 : vector<16x1xf32> to vector<16x32xf32>
    %86 = arith.subf %69, %85 : vector<16x32xf32>
    %cst_38 = arith.constant 9.99999996E-13 : f32
    %87 = vector.broadcast %cst_38 : f32 to vector<16x1xf32>
    %88 = arith.addf %84, %87 : vector<16x1xf32>
    %89 = math.rsqrt %88 : vector<16x1xf32>
    %90 = vector.broadcast %89 : vector<16x1xf32> to vector<16x32xf32>
    %91 = arith.mulf %86, %90 : vector<16x32xf32>
    %92 = vector.broadcast %71 : vector<1x32xf32> to vector<16x32xf32>
    %93 = arith.mulf %91, %92 : vector<16x32xf32>
    %94 = vector.broadcast %73 : vector<1x32xf32> to vector<16x32xf32>
    %95 = arith.addf %93, %94 : vector<16x32xf32>
    %c0_39 = arith.constant 0 : index
    %c0_40 = arith.constant 0 : index
    %c0_41 = arith.constant 0 : index
    %96 = vector.load %arg11[%c0_39, %c0_40, %c0_41] : memref<1x32x64xf32, #tpu.memory_space<vmem>>, vector<1x32x64xf32>
    %97 = vector.shape_cast %96 : vector<1x32x64xf32> to vector<32x64xf32>
    %cst_42 = arith.constant dense<0.000000e+00> : vector<16x64xf32>
    %98 = tpu.matmul %95, %97, %cst_42 {dimension_numbers = #tpu.dot_dimension_numbers<[1], [0], [0], [1], [0, 0, 1, 1], [], []>} : vector<16x32xf32>, vector<32x64xf32>, vector<16x64xf32> -> vector<16x64xf32>
    %c0_43 = arith.constant 0 : index
    %c0_44 = arith.constant 0 : index
    %c0_45 = arith.constant 0 : index
    %99 = vector.load %arg12[%c0_43, %c0_44, %c0_45] : memref<1x1x64xf32, #tpu.memory_space<vmem>>, vector<1x1x64xf32>
    %100 = vector.shape_cast %99 : vector<1x1x64xf32> to vector<1x64xf32>
    %101 = vector.broadcast %100 : vector<1x64xf32> to vector<16x64xf32>
    %102 = arith.addf %98, %101 : vector<16x64xf32>
    %cst_46 = arith.constant 5.000000e-01 : f32
    %103 = vector.broadcast %cst_46 : f32 to vector<16x64xf32>
    %104 = arith.mulf %103, %102 : vector<16x64xf32>
    %cst_47 = arith.constant 0.707106769 : f32
    %105 = vector.broadcast %cst_47 : f32 to vector<16x64xf32>
    %106 = arith.mulf %102, %105 : vector<16x64xf32>
    %107 = math.erf %106 : vector<16x64xf32>
    %cst_48 = arith.constant 1.000000e+00 : f32
    %108 = vector.broadcast %cst_48 : f32 to vector<16x64xf32>
    %109 = arith.addf %108, %107 : vector<16x64xf32>
    %110 = arith.mulf %104, %109 : vector<16x64xf32>
    %c0_49 = arith.constant 0 : index
    %c0_50 = arith.constant 0 : index
    %c0_51 = arith.constant 0 : index
    %111 = vector.load %arg13[%c0_49, %c0_50, %c0_51] : memref<1x64x32xf32, #tpu.memory_space<vmem>>, vector<1x64x32xf32>
    %112 = vector.shape_cast %111 : vector<1x64x32xf32> to vector<64x32xf32>
    %cst_52 = arith.constant dense<0.000000e+00> : vector<16x32xf32>
    %113 = tpu.matmul %110, %112, %cst_52 {dimension_numbers = #tpu.dot_dimension_numbers<[1], [0], [0], [1], [0, 0, 1, 1], [], []>} : vector<16x64xf32>, vector<64x32xf32>, vector<16x32xf32> -> vector<16x32xf32>
    %c0_53 = arith.constant 0 : index
    %c0_54 = arith.constant 0 : index
    %c0_55 = arith.constant 0 : index
    %114 = vector.load %arg14[%c0_53, %c0_54, %c0_55] : memref<1x1x32xf32, #tpu.memory_space<vmem>>, vector<1x1x32xf32>
    %115 = vector.shape_cast %114 : vector<1x1x32xf32> to vector<1x32xf32>
    %116 = vector.broadcast %115 : vector<1x32xf32> to vector<16x32xf32>
    %117 = arith.addf %113, %116 : vector<16x32xf32>
    %118 = arith.addf %117, %95 : vector<16x32xf32>
    %c0_56 = arith.constant 0 : index
    %c0_57 = arith.constant 0 : index
    %c0_58 = arith.constant 0 : index
    %119 = vector.load %arg15[%c0_56, %c0_57, %c0_58] : memref<1x1x32xf32, #tpu.memory_space<vmem>>, vector<1x1x32xf32>
    %120 = vector.shape_cast %119 : vector<1x1x32xf32> to vector<1x32xf32>
    %c0_59 = arith.constant 0 : index
    %c0_60 = arith.constant 0 : index
    %c0_61 = arith.constant 0 : index
    %121 = vector.load %arg16[%c0_59, %c0_60, %c0_61] : memref<1x1x32xf32, #tpu.memory_space<vmem>>, vector<1x1x32xf32>
    %122 = vector.shape_cast %121 : vector<1x1x32xf32> to vector<1x32xf32>
    %cst_62 = arith.constant dense<0.000000e+00> : vector<16xf32>
    %123 = vector.multi_reduction <add>, %118, %cst_62 [1] : vector<16x32xf32> to vector<16xf32>
    %124 = vector.shape_cast %123 : vector<16xf32> to vector<16x1xf32>
    %cst_63 = arith.constant 3.200000e+01 : f32
    %125 = vector.broadcast %cst_63 : f32 to vector<16x1xf32>
    %126 = arith.divf %124, %125 : vector<16x1xf32>
    %127 = vector.broadcast %126 : vector<16x1xf32> to vector<16x32xf32>
    %128 = arith.subf %118, %127 : vector<16x32xf32>
    %129 = arith.mulf %128, %128 : vector<16x32xf32>
    %cst_64 = arith.constant dense<0.000000e+00> : vector<16xf32>
    %130 = vector.multi_reduction <add>, %129, %cst_64 [1] : vector<16x32xf32> to vector<16xf32>
    %131 = vector.shape_cast %130 : vector<16xf32> to vector<16x1xf32>
    %cst_65 = arith.constant 3.200000e+01 : f32
    %132 = vector.broadcast %cst_65 : f32 to vector<16x1xf32>
    %133 = arith.divf %131, %132 : vector<16x1xf32>
    %134 = vector.broadcast %126 : vector<16x1xf32> to vector<16x32xf32>
    %135 = arith.subf %118, %134 : vector<16x32xf32>
    %cst_66 = arith.constant 9.99999996E-13 : f32
    %136 = vector.broadcast %cst_66 : f32 to vector<16x1xf32>
    %137 = arith.addf %133, %136 : vector<16x1xf32>
    %138 = math.rsqrt %137 : vector<16x1xf32>
    %139 = vector.broadcast %138 : vector<16x1xf32> to vector<16x32xf32>
    %140 = arith.mulf %135, %139 : vector<16x32xf32>
    %141 = vector.broadcast %120 : vector<1x32xf32> to vector<16x32xf32>
    %142 = arith.mulf %140, %141 : vector<16x32xf32>
    %143 = vector.broadcast %122 : vector<1x32xf32> to vector<16x32xf32>
    %144 = arith.addf %142, %143 : vector<16x32xf32>
    %c0_67 = arith.constant 0 : index
    %c0_68 = arith.constant 0 : index
    %145 = vector.load %arg21[%c0_67, %c0_68] : memref<16x32xf32, #tpu.memory_space<vmem>>, vector<16x32xf32>
    tpu.vector_store %arg21[%c0_67, %c0_68], %144 {strides = array<i32>} : memref<16x32xf32, #tpu.memory_space<vmem>>, vector<16x32xf32>,
    %c1_i32 = arith.constant 1 : i32
    %146 = arith.cmpi eq, %arg0, %c1_i32 : i32
    %147 = arith.extui %146 : i1 to i32
    %c0_i32_69 = arith.constant 0 : i32
    %148 = arith.cmpi ne, %147, %c0_i32_69 : i32
    scf.if %148 {
      %c0_70 = arith.constant 0 : index
      %c0_71 = arith.constant 0 : index
      %149 = vector.load %arg19[%c0_70, %c0_71] : memref<16x32xf32, #tpu.memory_space<vmem>>, vector<16x32xf32>
      tpu.vector_store %arg19[%c0_70, %c0_71], %144 {strides = array<i32>} : memref<16x32xf32, #tpu.memory_space<vmem>>, vector<16x32xf32>,
      %150 = vector.extract_strided_slice %144 {offsets = [0, 0], sizes = [1, 32], strides = [1, 1]} : vector<16x32xf32> to vector<1x32xf32>
      %151 = vector.extract_strided_slice %144 {offsets = [8, 0], sizes = [1, 32], strides = [1, 1]} : vector<16x32xf32> to vector<1x32xf32>
      %152 = tpu.concatenate %150, %151 in 0 : vector<1x32xf32>, vector<1x32xf32> -> vector<2x32xf32>
      %c0_72 = arith.constant 0 : index
      %c0_73 = arith.constant 0 : index
      %153 = vector.load %arg17[%c0_72, %c0_73] : memref<32x32xf32, #tpu.memory_space<vmem>>, vector<32x32xf32>
      %cst_74 = arith.constant dense<0.000000e+00> : vector<2x32xf32>
      %154 = tpu.matmul %152, %153, %cst_74 {dimension_numbers = #tpu.dot_dimension_numbers<[1], [0], [0], [1], [0, 0, 1, 1], [], []>} : vector<2x32xf32>, vector<32x32xf32>, vector<2x32xf32> -> vector<2x32xf32>
      %c0_75 = arith.constant 0 : index
      %c0_76 = arith.constant 0 : index
      %155 = vector.load %arg18[%c0_75, %c0_76] : memref<1x32xf32, #tpu.memory_space<vmem>>, vector<1x32xf32>
      %156 = vector.broadcast %155 : vector<1x32xf32> to vector<2x32xf32>
      %157 = arith.addf %154, %156 : vector<2x32xf32>
      %158 = math.tanh %157 : vector<2x32xf32>
      %c0_77 = arith.constant 0 : index
      %c0_78 = arith.constant 0 : index
      %159 = vector.load %arg20[%c0_77, %c0_78] : memref<2x32xf32, #tpu.memory_space<vmem>>, vector<2x32xf32>
      tpu.vector_store %arg20[%c0_77, %c0_78], %158 {strides = array<i32>} : memref<2x32xf32, #tpu.memory_space<vmem>>, vector<2x32xf32>,
    } else {
    }
    return
  }
  func.func @transform_0(%arg0: i32) -> (i32, i32) {
    %c0_i32 = arith.constant 0 : i32
    %c0_i32_0 = arith.constant 0 : i32
    %c0_i32_1 = arith.constant 0 : i32
    return %c0_i32, %c0_i32_0 : i32, i32
  }
  func.func @transform_1(%arg0: i32) -> (i32, i32) {
    %c0_i32 = arith.constant 0 : i32
    %c0_i32_0 = arith.constant 0 : i32
    %c0_i32_1 = arith.constant 0 : i32
    return %c0_i32, %c0_i32_0 : i32, i32
  }
  func.func @transform_2(%arg0: i32) -> (i32, i32) {
    %c0_i32 = arith.constant 0 : i32
    %c0_i32_0 = arith.constant 0 : i32
    %c0_i32_1 = arith.constant 0 : i32
    return %c0_i32, %c0_i32_0 : i32, i32
  }
  func.func @transform_3(%arg0: i32) -> (i32, i32, i32) {
    %c0_i32 = arith.constant 0 : i32
    %c0_i32_0 = arith.constant 0 : i32
    %c0_i32_1 = arith.constant 0 : i32
    %c0_i32_2 = arith.constant 0 : i32
    return %c0_i32, %c0_i32_0, %c0_i32_1 : i32, i32, i32
  }
  func.func @transform_4(%arg0: i32) -> (i32, i32, i32) {
    %c0_i32 = arith.constant 0 : i32
    %c0_i32_0 = arith.constant 0 : i32
    %c0_i32_1 = arith.constant 0 : i32
    return %arg0, %c0_i32, %c0_i32_0 : i32, i32, i32
  }
  func.func @transform_5(%arg0: i32) -> (i32, i32, i32) {
    %c0_i32 = arith.constant 0 : i32
    %c0_i32_0 = arith.constant 0 : i32
    %c0_i32_1 = arith.constant 0 : i32
    return %arg0, %c0_i32, %c0_i32_0 : i32, i32, i32
  }
  func.func @transform_6(%arg0: i32) -> (i32, i32, i32) {
    %c0_i32 = arith.constant 0 : i32
    %c0_i32_0 = arith.constant 0 : i32
    %c0_i32_1 = arith.constant 0 : i32
    return %arg0, %c0_i32, %c0_i32_0 : i32, i32, i32
  }
  func.func @transform_7(%arg0: i32) -> (i32, i32, i32) {
    %c0_i32 = arith.constant 0 : i32
    %c0_i32_0 = arith.constant 0 : i32
    %c0_i32_1 = arith.constant 0 : i32
    return %arg0, %c0_i32, %c0_i32_0 : i32, i32, i32
  }
  func.func @transform_8(%arg0: i32) -> (i32, i32, i32) {
    %c0_i32 = arith.constant 0 : i32
    %c0_i32_0 = arith.constant 0 : i32
    %c0_i32_1 = arith.constant 0 : i32
    return %arg0, %c0_i32, %c0_i32_0 : i32, i32, i32
  }
  func.func @transform_9(%arg0: i32) -> (i32, i32, i32) {
    %c0_i32 = arith.constant 0 : i32
    %c0_i32_0 = arith.constant 0 : i32
    %c0_i32_1 = arith.constant 0 : i32
    return %arg0, %c0_i32, %c0_i32_0 : i32, i32, i32
  }
  func.func @transform_10(%arg0: i32) -> (i32, i32, i32) {
    %c0_i32 = arith.constant 0 : i32
    %c0_i32_0 = arith.constant 0 : i32
    %c0_i32_1 = arith.constant 0 : i32
    return %arg0, %c0_i32, %c0_i32_0 : i32, i32, i32
  }
  func.func @transform_11(%arg0: i32) -> (i32, i32, i32) {
    %c0_i32 = arith.constant 0 : i32
    %c0_i32_0 = arith.constant 0 : i32
    %c0_i32_1 = arith.constant 0 : i32
    return %arg0, %c0_i32, %c0_i32_0 : i32, i32, i32
  }
  func.func @transform_12(%arg0: i32) -> (i32, i32, i32) {
    %c0_i32 = arith.constant 0 : i32
    %c0_i32_0 = arith.constant 0 : i32
    %c0_i32_1 = arith.constant 0 : i32
    return %arg0, %c0_i32, %c0_i32_0 : i32, i32, i32
  }
  func.func @transform_13(%arg0: i32) -> (i32, i32, i32) {
    %c0_i32 = arith.constant 0 : i32
    %c0_i32_0 = arith.constant 0 : i32
    %c0_i32_1 = arith.constant 0 : i32
    return %arg0, %c0_i32, %c0_i32_0 : i32, i32, i32
  }
  func.func @transform_14(%arg0: i32) -> (i32, i32, i32) {
    %c0_i32 = arith.constant 0 : i32
    %c0_i32_0 = arith.constant 0 : i32
    %c0_i32_1 = arith.constant 0 : i32
    return %arg0, %c0_i32, %c0_i32_0 : i32, i32, i32
  }
  func.func @transform_15(%arg0: i32) -> (i32, i32, i32) {
    %c0_i32 = arith.constant 0 : i32
    %c0_i32_0 = arith.constant 0 : i32
    %c0_i32_1 = arith.constant 0 : i32
    return %arg0, %c0_i32, %c0_i32_0 : i32, i32, i32
  }
  func.func @transform_16(%arg0: i32) -> (i32, i32) {
    %c0_i32 = arith.constant 0 : i32
    %c0_i32_0 = arith.constant 0 : i32
    %c0_i32_1 = arith.constant 0 : i32
    return %c0_i32, %c0_i32_0 : i32, i32
  }
  func.func @transform_17(%arg0: i32) -> (i32, i32) {
    %c0_i32 = arith.constant 0 : i32
    %c0_i32_0 = arith.constant 0 : i32
    %c0_i32_1 = arith.constant 0 : i32
    return %c0_i32, %c0_i32_0 : i32, i32
  }
  func.func @transform_18(%arg0: i32) -> (i32, i32) {
    %c0_i32 = arith.constant 0 : i32
    %c0_i32_0 = arith.constant 0 : i32
    %c0_i32_1 = arith.constant 0 : i32
    return %c0_i32, %c0_i32_0 : i32, i32
  }
  func.func @transform_19(%arg0: i32) -> (i32, i32) {
    %c0_i32 = arith.constant 0 : i32
    %c0_i32_0 = arith.constant 0 : i32
    %c0_i32_1 = arith.constant 0 : i32
    return %c0_i32, %c0_i32_0 : i32, i32
  }
}

</mosaic_0001>

<bundles_post_ra>
// kernel: bert_model.1
= control target key start
LH: loop header
LB: loop body
LE: loop exit
PB: predicated region body
PF: predicated region fallthrough
CT: control target
= control target key end

     0   :  { %s2327_s0 = inlined_call_operand.vmem [shape: f32[16,32], index: 0, kind: input, shape index: {}]   ;;  %s2328_s1 = inlined_call_operand.vmem [shape: f32[1,32], index: 1, kind: input, shape index: {}]   ;;  %s2329_s2 = inlined_call_operand.vmem [shape: f32[1,32], index: 2, kind: input, shape index: {}]   ;;  %s2330_s3 = inlined_call_operand.vmem [shape: f32[2,1,8], index: 3, kind: input, shape index: {}]   ;;  %s2331_s4 = inlined_call_operand.vmem [shape: f32[2,32,96], index: 4, kind: input, shape index: {}]   ;;  %s2332_s5 = inlined_call_operand.vmem [shape: f32[2,1,96], index: 5, kind: input, shape index: {}]   ;;  %s2333_s6 = inlined_call_operand.vmem [shape: f32[2,32,32], index: 6, kind: input, shape index: {}]   ;;  %s2334_s7 = inlined_call_operand.vmem [shape: f32[2,1,32], index: 7, kind: input, shape index: {}]   ;;  %s2335_s8 = inlined_call_operand.vmem [shape: f32[2,1,32], index: 8, kind: input, shape index: {}]   ;;  %s2336_s9 = inlined_call_operand.vmem [shape: f32[2,1,32], index: 9, kind: input, shape index: {}]   ;;  %s2337_s10 = inlined_call_operand.vmem [shape: f32[2,32,64], index: 10, kind: input, shape index: {}]   ;;  %s2338_s11 = inlined_call_operand.vmem [shape: f32[2,1,64], index: 11, kind: input, shape index: {}]   ;;  %s2339_s12 = inlined_call_operand.vmem [shape: f32[2,64,32], index: 12, kind: input, shape index: {}]   ;;  %s2340_s13 = inlined_call_operand.vmem [shape: f32[2,1,32], index: 13, kind: input, shape index: {}]   ;;  %s2341_s14 = inlined_call_operand.vmem [shape: f32[2,1,32], index: 14, kind: input, shape index: {}]   ;;  %s2342_s15 = inlined_call_operand.vmem [shape: f32[2,1,32], index: 15, kind: input, shape index: {}]   ;;  %s2343_s16 = inlined_call_operand.vmem [shape: f32[32,32], index: 16, kind: input, shape index: {}]   ;;  %s2344_s17 = inlined_call_operand.vmem [shape: f32[1,32], index: 17, kind: input, shape index: {}]   ;;  %s2345_s18 = inlined_call_operand.hbm [shape: f32[16,32], index: 18, kind: output, shape index: {0}]   ;;  %s2346_s19 = inlined_call_operand.hbm [shape: f32[2,32], index: 19, kind: output, shape index: {1}]  }
   0x1   :  { %2351 = sst [smem:[#allocation10_spill]] %s2327_s0 }
   0x2   :  { %2352 = sst [smem:[#allocation11_spill]] %s2328_s1 }
   0x3   :  { %2353 = sst [smem:[#allocation12_spill]] %s2329_s2 }
   0x4   :  { %2354 = sst [smem:[#allocation13_spill]] %s2330_s3 }
   0x5   :  { %2355 = sst [smem:[#allocation14_spill]] %s2331_s4 }
   0x6   :  { %2356 = sst [smem:[#allocation15_spill]] %s2333_s6 }
   0x7   :  { %2357 = sst [smem:[#allocation16_spill]] %s2343_s16 }
   0x8   :  { %2358 = sst [smem:[#allocation17_spill]] %s2344_s17 }
   0x9   :  { %2359 = sst [smem:[#allocation18_spill]] %s2345_s18 }
   0xa   :  { %2360 = sst [smem:[#allocation19_spill]] %s2346_s19 }
   0xb   :  { %25 = vsyncpa [#allocation4], 0 }
   0xc   :  { %26 = vsyncpa [#allocation6], 0  ;;  %s2028_s0 = smov 0  }
   0xd LB: > { %2361 = sst [smem:[#allocation9_spill]] %s1914_s0  ;;  %s2034_s30 = sadd.s32 4294967295, %s1914_s0   ;;  %s1914_s0 = sphi %s2028_s0, %s32_s0  }
   0xe   : > { %p1717_p0 = scmp.ge.s32.totalorder %s1914_s0, 1  ;;  %p626_p1 = scmp.lt.s32.totalorder %s1914_s0, 3 }
  0x10   : > { %p627_p2 = pnand %p1717_p0, %p626_p1 }
  0x11   : > { %p716_p3 = scmp.lt.s32.totalorder (!%p627_p2), %s2034_s30, 1  ;;  %s2362_s4 = sld [smem:[#allocation14_spill]] (!%p627_p2) }
  0x12   : > { %630 = sbr.rel (%p627_p2) target bundleno = 2789 (0xae5), region = 92  ;;  %s2363_s6 = sld [smem:[#allocation15_spill]] (!%p627_p2) }
  0x13   : > { %p1726_p4 = scmp.ne.s32.totalorder (!%p627_p2), %s2034_s30, 0 }
  0x17   : > { %s2040_s20 = scalar_select %p716_p3, %s2034_s30, 1 }
  0x18   : > { %s2364_s28 = sld [smem:[#allocation10_spill]] (!%p1726_p4) }
  0x19   : > { %s1757_s21 = sshll.u32 %s2040_s20, 5  ;;  %s1760_s16 = sshll.u32 %s2040_s20, 6 }
  0x1a   : > { %s2050_s25 = scalar_lea.vmem %s2362_s4, %s1757_s21  ;;  %s2055_s27 = scalar_lea.vmem %s2363_s6, %s1757_s21 }
  0x1b   : > { %s2072_s4 = scalar_lea.vmem %s2337_s10, %s1757_s21  ;;  %s745_s6 = scalar_lea.vmem %s2338_s11, %s2040_s20 }
  0x1c   : > { %s2082_s0 = scalar_lea.vmem %s2339_s12, %s1760_s16  ;;  %s753_s1 = scalar_lea.vmem %s2340_s13, %s2040_s20 }
  0x1d   : > { %s756_s23 = scalar_lea.vmem %s2341_s14, %s2040_s20  ;;  %s759_s17 = scalar_lea.vmem %s2342_s15, %s2040_s20 }
  0x1e   : > { %763 = sbr.rel (%p1726_p4) target bundleno = 313 (0x139), region = 96  ;;  %s2365_s19 = sld [smem:[#allocation11_spill]] (!%p1726_p4) }
  0x1f   : > { %s2366_s24 = sld [smem:[#allocation12_spill]] (!%p1726_p4) }
  0x23   : > { %v764_v0 = vld [vmem:[%s2364_s28] sm:$0xff]  ;;  %vm768_vm0 = vcmask 261120   ;;  %v765_v2 = vld [vmem:[%s2364_s28 + $0x8] sm:$0xff]  ;;  %v1916_v4 = vmov 32.0  }
  0x24   : > { %v769_v1 = vsel %vm768_vm0, %v764_v0, 0.0  ;;  %v772_v3 = vsel %vm768_vm0, %v765_v2, 0.0  ;;  %1795 = vrcp.f32 %v1916_v4  ;;  %v1793_v35 = vld [vmem:[%s2365_s19] ss:$0 sm:$0xff] }
  0x25   : > { %770 = vadd.xlane.f32.xlu0 %v769_v1  ;;  %v1794_v38 = vld [vmem:[%s2366_s24] ss:$0 sm:$0xff] }
  0x2a   : > { %v1796_v5 = vpop.eup %1795 }
  0x2b   : > { %v776_v6 = vmul.f32 32.0, %v1796_v5  ;;  %vm780_vm1 = vweird.f32 %v1796_v5 }
  0x2d   : > { %773 = vadd.xlane.f32.xlu0 %v772_v3  ;;  %v777_v7 = vsub.f32 1.0, %v776_v6 }
  0x2f   : > { %v778_v8 = vmul.f32 %v1796_v5, %v777_v7 }
  0x31   : > { %v779_v9 = vadd.f32 %v1796_v5, %v778_v8 }
  0x33   : > { %v781_v10 = vsel %vm780_vm1, %v1796_v5, %v779_v9 }
  0x98   : > { %v771_v11 = vpop.xlane.xlu0 %770 }
  0x99   : > { %v782_v12 = vmul.f32 %v781_v10, %v771_v11 }
  0x9b   : > { %v784_v13 = vsub.f32 %v764_v0, %v782_v12 }
  0x9d   : > { %v786_v14 = vmul.f32 %v784_v13, %v784_v13 }
  0x9f   : > { %v788_v15 = vsel %vm768_vm0, %v786_v14, 0.0 }
  0xa0   : > { %789 = vadd.xlane.f32.xlu1 %v788_v15  ;;  %v774_v16 = vpop.xlane.xlu0 %773 }
  0xa1   : > { %v783_v17 = vmul.f32 %v781_v10, %v774_v16 }
  0xa3   : > { %v785_v18 = vsub.f32 %v765_v2, %v783_v17 }
  0xa5   : > { %v787_v19 = vmul.f32 %v785_v18, %v785_v18 }
  0xa7   : > { %v791_v20 = vsel %vm768_vm0, %v787_v19, 0.0 }
  0xa8   : > { %792 = vadd.xlane.f32.xlu1 %v791_v20 }
 0x113   : > { %v790_v21 = vpop.xlane.xlu1 %789 }
 0x114   : > { %v794_v22 = vmul.f32 %v790_v21, %v781_v10 }
 0x116   : > { %v796_v23 = vadd.f32 1e-12, %v794_v22 }
 0x118   : > { %1797 = vrsqrt.f32 %v796_v23  ;;  %vm804_vm3 = vweird.f32 %v796_v23 }
 0x11b   : > { %v793_v24 = vpop.xlane.xlu1 %792 }
 0x11c   : > { %v795_v25 = vmul.f32 %v793_v24, %v781_v10 }
 0x11e   : > { %v1798_v26 = vpop.eup %1797  ;;  %v797_v27 = vadd.f32 1e-12, %v795_v25 }
 0x11f   : > { %v799_v28 = vmul.f32 %v1798_v26, %v796_v23  ;;  %vm805_vm2 = vweird.f32 %v1798_v26 }
 0x120   : > { %1799 = vrsqrt.f32 %v797_v27  ;;  %vm806_vm4 = vmor %vm804_vm3, %vm805_vm2  ;;  %vm814_vm6 = vweird.f32 %v797_v27 }
 0x121   : > { %v800_v29 = vmul.f32 %v1798_v26, %v799_v28 }
 0x123   : > { %v801_v30 = vmul.f32 0.5, %v800_v29 }
 0x125   : > { %v802_v31 = vsub.f32 1.5, %v801_v30 }
 0x126   : > { %v1800_v32 = vpop.eup %1799 }
 0x127   : > { %v803_v33 = vmul.f32 %v1798_v26, %v802_v31  ;;  %v809_v34 = vmul.f32 %v1800_v32, %v797_v27  ;;  %vm815_vm5 = vweird.f32 %v1800_v32 }
 0x128   : > { %vm816_vm7 = vmor %vm814_vm6, %vm815_vm5 }
 0x129   : > { %v807_v36 = vsel %vm806_vm4, %v1798_v26, %v803_v33  ;;  %v810_v37 = vmul.f32 %v1800_v32, %v809_v34 }
 0x12a   : > { %v818_v39 = vmul.f32 %v807_v36, %v784_v13 }
 0x12b   : > { %v811_v40 = vmul.f32 0.5, %v810_v37 }
 0x12c   : > { %v823_v41 = vmul.f32 %v1793_v35, %v818_v39 }
 0x12d   : > { %v812_v42 = vsub.f32 1.5, %v811_v40 }
 0x12e   : > { %v828_v43 = vadd.f32 %v1794_v38, %v823_v41 }
 0x12f   : > { %v813_v44 = vmul.f32 %v1800_v32, %v812_v42 }
 0x130   : > { %830 = vst.msk [vmem:[#allocation2] sm:$0xff] %vm768_vm0, %v828_v43 }
 0x131   : > { %v817_v45 = vsel %vm816_vm7, %v1800_v32, %v813_v44 }
 0x132   : > { %v819_v46 = vmul.f32 %v817_v45, %v785_v18 }
 0x134   : > { %v824_v47 = vmul.f32 %v1793_v35, %v819_v46 }
 0x136   : > { %v829_v48 = vadd.f32 %v1794_v38, %v824_v47 }
 0x138   : > { %831 = vst.msk [vmem:[#allocation2 + $0x8] sm:$0xff] %vm768_vm0, %v829_v48 }
 0x139 PF: > { %v837_v49 = vld [vmem:[%s2050_s25 + $0x18] sm:$0xff]  ;;  %v836_v50 = vld [vmem:[%s2050_s25 + $0x10] sm:$0xff]  ;;  %v835_v51 = vld [vmem:[%s2050_s25 + $0x8] sm:$0xff]  ;;  %vm842_vm8 = vcmask 261120   ;;  %s2367_s16 = scalar_lea.vmem %s2332_s5, %s2040_s20  ;;  %s1917_s29 = smov 64   ;;  %vm877_vm9 = vcmask 130048  }
 0x13a   : > { %861 = vmatpush.msra.mxu0 %v837_v49  ;;  %v834_v52 = vld [vmem:[%s2050_s25] sm:$0xff]  ;;  %s1918_s25 = smov 96   ;;  %s1919_s2 = smov 80   ;;  %vm939_vm10 = vcmask 64512  }
 0x13b   : > { %v2119_v53 = vld [vmem:[#allocation2] sm:$0xff]  ;;  %s1920_s18 = smov 112   ;;  %s2368_s21 = sld [smem:[#allocation13_spill]] }
 0x13c   : > { %862 = vmatpush.msra.mxu0 %v836_v50  ;;  %v1801_v54 = vld [vmem:[%s2367_s16] ss:$0 sm:$0xff]  ;;  %s1921_s26 = smov 48   ;;  %s1922_s16 = smov 16  }
 0x13d   : > { %s2371_s24 = scalar_lea.vmem %s2336_s9, %s2040_s20  ;;  %p1749_p5 = scmp.ne.s32.totalorder %s2034_s30, 1 }
 0x13e   : > { %863 = vmatpush.msra.mxu0 %v835_v51 }
 0x13f   : > { %v2140_v60 = vld [vmem:[#allocation2 + $0x8] sm:$0xff] }
 0x140   : > { %864 = vmatpush.msra.mxu0 %v834_v52 }
 0x141   : > { %1727 = vmatmul.msk.f32.vlgmr.msra.gmra.mxu0 %vm842_vm8, %v2119_v53  ;;  %v1802_v61 = vld [vmem:[%s2368_s21] ss:$0 sm:$0xff]  ;;  %v1803_v21 = vld [vmem:[%s2368_s21 + $0x1] ss:$0 sm:$0xff] }
 0x149   : > { %1728 = vmatmul.msk.f32.gmra.mxu0 %vm842_vm8, %v2140_v60 }
 0x1be   : > { %v866_v55 = vpop.f32.mrf.mxu0 }
 0x1bf   : > { %v2128_v56 = vadd.f32 %v1801_v54, %v866_v55 }
 0x1c1   : > { %962 = vrot.lane.b32.xlu2 %v2128_v56, %s1917_s29  ;;  %875 = vrot.lane.b32.xlu0 %v2128_v56, %s1918_s25 }
 0x1c6   : > { %v869_v2 = vpop.f32.mrf.mxu0 }
 0x1c7   : > { %v2148_v3 = vadd.f32 %v1801_v54, %v869_v2 }
 0x1c9   : > { %1016 = vrot.lane.b32.xlu2 %v2128_v56, %s1919_s2 }
 0x1d1   : > { %1014 = vrot.lane.b32.xlu2 %v2128_v56, %s1920_s18 }
 0x1d9   : > { %1044 = vrot.lane.b32.xlu2 %v2148_v3, %s1919_s2  ;;  %s2369_s2 = scalar_lea.vmem %s2334_s7, %s2040_s20 }
 0x1e1   : > { %1042 = vrot.lane.b32.xlu2 %v2148_v3, %s1920_s18  ;;  %s2370_s18 = scalar_lea.vmem %s2335_s8, %s2040_s20 }
 0x21b   : > { %v963_v57 = vpop.permute.xlu2 %962 }
 0x223   : > { %v1017_v59 = vpop.permute.xlu2 %1016 }
 0x22b   : > { %v1015_v12 = vpop.permute.xlu2 %1014 }
 0x233   : > { %v876_v58 = vpop.permute.xlu0 %875  ;;  %v1045_v14 = vpop.permute.xlu2 %1044 }
 0x234   : > { %1729 = vmatpush.xpose.msk.msra.mxu1 %vm877_vm9, %v876_v58 }
 0x237   : > { %1730 = vmatmul.msk.f32.vlgmr.msra.gmra.mxu1 %vm877_vm9, %v2128_v56 }
 0x238   : > { %983 = vmatpush.msrb.mxu1 %v963_v57 }
 0x23a   : > { %1735 = vmatpush.xpose.msk.msra.mxu1 %vm877_vm9, %v1017_v59 }
 0x23b   : > { %v1043_v15 = vpop.permute.xlu2 %1042 }
 0x2b4   : > { %v899_v62 = vpop.f32.mrf.mxu1 }
 0x2b5   : > { %v929_v63 = vmul.f32 0.25, %v899_v62  ;;  %v1161_v62 = vld [vmem:[%s2055_s27 + $0x18] sm:$0xff] }
 0x2b7   : > { %v937_v0 = vadd.f32 %v1802_v61, %v929_v63  ;;  %v1160_v63 = vld [vmem:[%s2055_s27 + $0x10] sm:$0xff] }
 0x2b9   : > { %v940_v1 = vsel %vm939_vm10, %v937_v0, -inf }
 0x2ba   : > { %941 = vmax.xlane.f32.xlu0 %v940_v1  ;;  %v1158_v1 = vld [vmem:[%s2055_s27] sm:$0xff] }
 0x32d   : > { %v942_v4 = vpop.xlane.xlu0 %941 }
 0x32e   : > { %v946_v5 = vsub.f32 %v937_v0, %v942_v4  ;;  %v1159_v0 = vld [vmem:[%s2055_s27 + $0x8] sm:$0xff] }
 0x330   : > { %v948_v6 = vmul.f32 1.442695, %v946_v5 }
 0x332   : > { %1811 = vpow2.f32 %v948_v6  ;;  %v1804_v6 = vld [vmem:[%s2369_s2] ss:$0 sm:$0xff] }
 0x338   : > { %v1812_v7 = vpop.eup %1811 }
 0x339   : > { %v952_v8 = vsel %vm939_vm10, %v1812_v7, 0.0 }
 0x33a   : > { %953 = vadd.xlane.f32.xlu1 %v952_v8 }
 0x353   : > { %903 = vrot.lane.b32.xlu1 %v2148_v3, %s1918_s25 }
 0x3ad   : > { %v954_v9 = vpop.xlane.xlu1 %953 }
 0x3ae   : > { %1813 = vrcp.f32 %v954_v9 }
 0x3b4   : > { %v1814_v10 = vpop.eup %1813 }
 0x3b5   : > { %v960_v11 = vmul.f32 %v1814_v10, %v1812_v7 }
 0x3b7   : > { %1733 = vmatmul.msk.f32.vlgmr.msrb.gmra.mxu1 %vm939_vm10, %v960_v11 }
 0x3bf   : > { %1736 = vmatmul.msk.f32.vlgmr.msra.gmra.mxu1 %vm877_vm9, %v1015_v12 }
 0x3c5   : > { %v904_v13 = vpop.permute.xlu1 %903 }
 0x3c6   : > { %1731 = vmatpush.xpose.msk.msra.mxu2 %vm877_vm9, %v904_v13 }
 0x3c9   : > { %1732 = vmatmul.msk.f32.vlgmr.msra.gmra.mxu2 %vm877_vm9, %v2148_v3 }
 0x3ca   : > { %1737 = vmatpush.xpose.msk.msrb.mxu2 %vm877_vm9, %v1045_v14 }
 0x3ce   : > { %1184 = vmatpush.msra.mxu2 %v1161_v62 }
 0x3d0   : > { %1185 = vmatpush.msra.mxu2 %v1160_v63 }
 0x3d1   : > { %1738 = vmatmul.msk.f32.vlgmr.msrb.gmra.mxu2 %vm877_vm9, %v1043_v15  ;;  %v1923_v15 = vmov 32.0  }
 0x3d2   : > { %1186 = vmatpush.msra.mxu2 %v1159_v0  ;;  %v1807_v0 = vld [vmem:[%s745_s6] ss:$0 sm:$0xff] }
 0x3d4   : > { %1187 = vmatpush.msra.mxu2 %v1158_v1 }
 0x434   : > { %v2162_v16 = vpop.f32.mrf.mxu1 }
 0x43c   : > { %v1039_v17 = vpop.f32.mrf.mxu1 }
 0x43d   : > { %v1070_v18 = vmul.f32 0.25, %v1039_v17 }
 0x43f   : > { %v1072_v19 = vadd.f32 %v1802_v61, %v1070_v18 }
 0x441   : > { %v1074_v20 = vsel %vm939_vm10, %v1072_v19, -inf }
 0x442   : > { %1075 = vmax.xlane.f32.xlu2 %v1074_v20 }
 0x44c   : > { %v926_v22 = vpop.f32.mrf.mxu2 }
 0x44d   : > { %v930_v23 = vmul.f32 0.25, %v926_v22 }
 0x44f   : > { %v938_v24 = vadd.f32 %v1803_v21, %v930_v23 }
 0x451   : > { %v943_v25 = vsel %vm939_vm10, %v938_v24, -inf }
 0x452   : > { %944 = vmax.xlane.f32.xlu1 %v943_v25 }
 0x454   : > { %v1067_v26 = vpop.f32.mrf.mxu2 }
 0x455   : > { %v1071_v27 = vmul.f32 0.25, %v1067_v26 }
 0x457   : > { %v1073_v28 = vadd.f32 %v1803_v21, %v1071_v27 }
 0x459   : > { %v1077_v29 = vsel %vm939_vm10, %v1073_v28, -inf }
 0x45a   : > { %1078 = vmax.xlane.f32.xlu0 %v1077_v29 }
 0x46b   : > { %1096 = vrot.lane.b32.xlu1 %v2128_v56, %s1921_s26 }
 0x4b5   : > { %v1076_v30 = vpop.xlane.xlu2 %1075 }
 0x4b6   : > { %v1080_v33 = vsub.f32 %v1072_v19, %v1076_v30  ;;  %v1263_v30 = vld [vmem:[%s2072_s4 + $0x18] sm:$0xff] }
 0x4b7   : > { %1286 = vmatpush.msrb.mxu0 %v1263_v30 }
 0x4b8   : > { %v1082_v35 = vmul.f32 1.442695, %v1080_v33  ;;  %v1260_v33 = vld [vmem:[%s2072_s4] sm:$0xff] }
 0x4c5   : > { %v945_v31 = vpop.xlane.xlu1 %944 }
 0x4c6   : > { %v947_v32 = vsub.f32 %v938_v24, %v945_v31  ;;  %v1262_v31 = vld [vmem:[%s2072_s4 + $0x10] sm:$0xff] }
 0x4c7   : > { %1287 = vmatpush.msrb.mxu0 %v1262_v31  ;;  %v1386_v31 = vld [vmem:[%s2082_s0 + $0x8] sm:$0xff] }
 0x4c8   : > { %v950_v34 = vmul.f32 1.442695, %v947_v32  ;;  %v1261_v32 = vld [vmem:[%s2072_s4 + $0x8] sm:$0xff] }
 0x4c9   : > { %1288 = vmatpush.msrb.mxu0 %v1261_v32 }
 0x4ca   : > { %1815 = vpow2.f32 %v950_v34 }
 0x4cb   : > { %1817 = vpow2.f32 %v1082_v35  ;;  %1289 = vmatpush.msrb.mxu0 %v1260_v33 }
 0x4cd   : > { %v1079_v36 = vpop.xlane.xlu0 %1078 }
 0x4ce   : > { %v1081_v37 = vsub.f32 %v1073_v28, %v1079_v36 }
 0x4d0   : > { %v1816_v38 = vpop.eup %1815  ;;  %v1084_v39 = vmul.f32 1.442695, %v1081_v37 }
 0x4d1   : > { %v955_v40 = vsel %vm939_vm10, %v1816_v38, 0.0  ;;  %v1818_v41 = vpop.eup %1817 }
 0x4d2   : > { %1819 = vpow2.f32 %v1084_v39  ;;  %956 = vadd.xlane.f32.xlu0 %v955_v40  ;;  %v1086_v44 = vsel %vm939_vm10, %v1818_v41, 0.0 }
 0x4d8   : > { %v1820_v42 = vpop.eup %1819 }
 0x4d9   : > { %v1089_v43 = vsel %vm939_vm10, %v1820_v42, 0.0 }
 0x4da   : > { %1090 = vadd.xlane.f32.xlu2 %v1089_v43  ;;  %1087 = vadd.xlane.f32.xlu0 %v1086_v44 }
 0x4dd   : > { %v1097_v55 = vpop.permute.xlu1 %1096 }
 0x4ee   : > { %988 = vrot.lane.b32.xlu0 %v2148_v3, %s1917_s29 }
 0x4f2   : > { %1122 = vrot.lane.b32.xlu2 %v2148_v3, %s1921_s26  ;;  %s2373_s26 = sld [smem:[#allocation17_spill]] (!%p1749_p5) }
 0x545   : > { %v957_v46 = vpop.xlane.xlu0 %956 }
 0x54d   : > { %v1091_v45 = vpop.xlane.xlu2 %1090  ;;  %v1088_v50 = vpop.xlane.xlu0 %1087 }
 0x54e   : > { %1821 = vrcp.f32 %v1091_v45 }
 0x54f   : > { %1823 = vrcp.f32 %v957_v46 }
 0x550   : > { %1825 = vrcp.f32 %v1088_v50 }
 0x551   : > { %1827 = vrcp.f32 %v1923_v15  ;;  %v1390_v15 = vld [vmem:[%s2082_s0 + $0x28] sm:$0xff] }
 0x554   : > { %v1822_v47 = vpop.eup %1821 }
 0x555   : > { %v1095_v48 = vmul.f32 %v1822_v47, %v1820_v42  ;;  %v1123_v49 = vpop.permute.xlu2 %1122  ;;  %v1824_v51 = vpop.eup %1823 }
 0x556   : > { %1143 = vmatpush.msrb.mxu1 %v1123_v49  ;;  %v961_v54 = vmul.f32 %v1824_v51, %v1816_v38  ;;  %v1826_v56 = vpop.eup %1825 }
 0x557   : > { %1740 = vmatmul.msk.f32.vlgmr.msrb.gmra.mxu1 %vm939_vm10, %v1095_v48  ;;  %v1094_v57 = vmul.f32 %v1826_v56, %v1818_v41  ;;  %v1805_v48 = vld [vmem:[%s2370_s18] ss:$0 sm:$0xff] }
 0x560   : > { %v989_v52 = vpop.permute.xlu0 %988 }
 0x561   : > { %1009 = vmatpush.msra.mxu3 %v989_v52  ;;  %v1806_v52 = vld [vmem:[%s2371_s24] ss:$0 sm:$0xff] }
 0x562   : > { %1734 = vmatmul.msk.f32.vlgmr.msra.gmra.mxu3 %vm939_vm10, %v961_v54 }
 0x563   : > { %1117 = vmatpush.msrb.mxu3 %v1097_v55 }
 0x56a   : > { %1739 = vmatmul.msk.f32.vlgmr.msrb.gmra.mxu3 %vm939_vm10, %v1094_v57 }
 0x5d4   : > { %v1145_v58 = vpop.f32.mrf.mxu1 }
 0x5d5   : > { %1152 = vrot.lane.b32.xlu1 %v1145_v58, %s1922_s16 }
 0x5e5   : > { %v1011_v59 = vpop.f32.mrf.mxu3 }
 0x5ed   : > { %v1119_v61 = vpop.f32.mrf.mxu3 }
 0x5ee   : > { %1150 = vrot.lane.b32.xlu0 %v1119_v61, %s1922_s16 }
 0x647   : > { %v1153_v4 = vpop.permute.xlu1 %1152 }
 0x648   : > { %v1157_v5 = vsel %vm877_vm9, %v1011_v59, %v1153_v4 }
 0x660   : > { %v1151_v2 = vpop.permute.xlu0 %1150 }
 0x661   : > { %v1156_v3 = vsel %vm877_vm9, %v2162_v16, %v1151_v2  ;;  %v1828_v16 = vpop.eup %1827  ;;  %vm1397_vm9 = vcmask 523264  }
 0x662   : > { %1741 = vmatmul.msk.f32.vlgmr.msra.gmra.mxu2 %vm842_vm8, %v1156_v3  ;;  %v1206_v17 = vmul.f32 32.0, %v1828_v16  ;;  %vm1210_vm11 = vweird.f32 %v1828_v16 }
 0x664   : > { %v1207_v18 = vsub.f32 1.0, %v1206_v17 }
 0x666   : > { %v1208_v19 = vmul.f32 %v1828_v16, %v1207_v18 }
 0x668   : > { %v1209_v20 = vadd.f32 %v1828_v16, %v1208_v19  ;;  %v1389_v19 = vld [vmem:[%s2082_s0 + $0x20] sm:$0xff] }
 0x66a   : > { %1742 = vmatmul.msk.f32.gmra.mxu2 %vm842_vm8, %v1157_v5 }
 0x6e5   : > { %v1189_v7 = vpop.f32.mrf.mxu2 }
 0x6e6   : > { %v1190_v8 = vadd.f32 %v1804_v6, %v1189_v7  ;;  %v1392_v7 = vld [vmem:[%s2082_s0 + $0x38] sm:$0xff] }
 0x6e7   : > { %1412 = vmatpush.msra.mxu3 %v1392_v7 }
 0x6e8   : > { %v1195_v9 = vadd.f32 %v1190_v8, %v2119_v53  ;;  %v2198_v53 = vsel %vm1210_vm11, %v1828_v16, %v1209_v20 }
 0x6ea   : > { %v1199_v10 = vsel %vm842_vm8, %v1195_v9, 0.0 }
 0x6eb   : > { %1200 = vadd.xlane.f32.xlu0 %v1199_v10 }
 0x6ed   : > { %v1192_v11 = vpop.f32.mrf.mxu2 }
 0x6ee   : > { %v1193_v12 = vadd.f32 %v1804_v6, %v1192_v11  ;;  %v1391_v11 = vld [vmem:[%s2082_s0 + $0x30] sm:$0xff] }
 0x6ef   : > { %1413 = vmatpush.msra.mxu3 %v1391_v11 }
 0x6f0   : > { %v1196_v13 = vadd.f32 %v1193_v12, %v2140_v60 }
 0x6f1   : > { %1414 = vmatpush.msra.mxu3 %v1390_v15 }
 0x6f2   : > { %v1202_v14 = vsel %vm842_vm8, %v1196_v13, 0.0 }
 0x6f3   : > { %1203 = vadd.xlane.f32.xlu1 %v1202_v14  ;;  %1415 = vmatpush.msra.mxu3 %v1389_v19 }
 0x75e   : > { %v1201_v21 = vpop.xlane.xlu0 %1200 }
 0x75f   : > { %v1212_v22 = vmul.f32 %v2198_v53, %v1201_v21 }
 0x761   : > { %v1214_v60 = vsub.f32 %v1195_v9, %v1212_v22 }
 0x763   : > { %v1216_v23 = vmul.f32 %v1214_v60, %v1214_v60 }
 0x765   : > { %v1218_v24 = vsel %vm842_vm8, %v1216_v23, 0.0 }
 0x766   : > { %1219 = vadd.xlane.f32.xlu2 %v1218_v24  ;;  %v1204_v25 = vpop.xlane.xlu1 %1203 }
 0x767   : > { %v1213_v26 = vmul.f32 %v2198_v53, %v1204_v25 }
 0x769   : > { %v1215_v27 = vsub.f32 %v1196_v13, %v1213_v26  ;;  %v1387_v26 = vld [vmem:[%s2082_s0 + $0x10] sm:$0xff] }
 0x76b   : > { %v1217_v28 = vmul.f32 %v1215_v27, %v1215_v27 }
 0x76d   : > { %v1221_v29 = vsel %vm842_vm8, %v1217_v28, 0.0 }
 0x76e   : > { %1222 = vadd.xlane.f32.xlu0 %v1221_v29 }
 0x7d9   : > { %v1220_v34 = vpop.xlane.xlu2 %1219 }
 0x7da   : > { %v1224_v35 = vmul.f32 %v1220_v34, %v2198_v53 }
 0x7dc   : > { %v1226_v36 = vadd.f32 1e-12, %v1224_v35  ;;  %v1385_v35 = vld [vmem:[%s2082_s0] sm:$0xff] }
 0x7de   : > { %1829 = vrsqrt.f32 %v1226_v36  ;;  %vm1234_vm13 = vweird.f32 %v1226_v36 }
 0x7e1   : > { %v1223_v37 = vpop.xlane.xlu0 %1222 }
 0x7e2   : > { %v1225_v38 = vmul.f32 %v1223_v37, %v2198_v53 }
 0x7e4   : > { %v1830_v39 = vpop.eup %1829  ;;  %v1227_v40 = vadd.f32 1e-12, %v1225_v38 }
 0x7e5   : > { %v1229_v41 = vmul.f32 %v1830_v39, %v1226_v36  ;;  %vm1235_vm12 = vweird.f32 %v1830_v39 }
 0x7e6   : > { %1831 = vrsqrt.f32 %v1227_v40  ;;  %vm1236_vm14 = vmor %vm1234_vm13, %vm1235_vm12  ;;  %vm1244_vm0 = vweird.f32 %v1227_v40 }
 0x7e7   : > { %v1230_v42 = vmul.f32 %v1830_v39, %v1229_v41 }
 0x7e9   : > { %v1231_v43 = vmul.f32 0.5, %v1230_v42 }
 0x7eb   : > { %v1232_v44 = vsub.f32 1.5, %v1231_v43 }
 0x7ec   : > { %v1832_v45 = vpop.eup %1831 }
 0x7ed   : > { %v1233_v46 = vmul.f32 %v1830_v39, %v1232_v44  ;;  %v1239_v47 = vmul.f32 %v1832_v45, %v1227_v40  ;;  %vm1245_vm15 = vweird.f32 %v1832_v45 }
 0x7ee   : > { %vm1246_vm1 = vmor %vm1244_vm0, %vm1245_vm15 }
 0x7ef   : > { %v1237_v49 = vsel %vm1236_vm14, %v1830_v39, %v1233_v46  ;;  %v1240_v50 = vmul.f32 %v1832_v45, %v1239_v47 }
 0x7f0   : > { %v1248_v51 = vmul.f32 %v1237_v49, %v1214_v60  ;;  %v1388_v60 = vld [vmem:[%s2082_s0 + $0x18] sm:$0xff] }
 0x7f1   : > { %v1241_v54 = vmul.f32 0.5, %v1240_v50  ;;  %1416 = vmatpush.msra.mxu3 %v1388_v60 }
 0x7f2   : > { %v1253_v55 = vmul.f32 %v1805_v48, %v1248_v51 }
 0x7f3   : > { %v1242_v56 = vsub.f32 1.5, %v1241_v54  ;;  %1417 = vmatpush.msra.mxu3 %v1387_v26 }
 0x7f4   : > { %v2220_v57 = vadd.f32 %v1806_v52, %v1253_v55 }
 0x7f5   : > { %v1243_v58 = vmul.f32 %v1832_v45, %v1242_v56  ;;  %1418 = vmatpush.msra.mxu3 %v1386_v31  ;;  %v1808_v31 = vld [vmem:[%s753_s1] ss:$0 sm:$0xff] }
 0x7f6   : > { %1743 = vmatmul.msk.f32.vlgmr.msrb.gmra.mxu0 %vm842_vm8, %v2220_v57 }
 0x7f7   : > { %v1247_v59 = vsel %vm1246_vm1, %v1832_v45, %v1243_v58  ;;  %1419 = vmatpush.msra.mxu3 %v1385_v35 }
 0x7f8   : > { %v1249_v61 = vmul.f32 %v1247_v59, %v1215_v27 }
 0x7fa   : > { %v1254_v62 = vmul.f32 %v1805_v48, %v1249_v61 }
 0x7fc   : > { %v2224_v63 = vadd.f32 %v1806_v52, %v1254_v62 }
 0x7fe   : > { %1744 = vmatmul.msk.f32.gmra.mxu0 %vm842_vm8, %v2224_v63 }
 0x873   : > { %v1291_v1 = vpop.f32.mrf.mxu0 }
 0x874   : > { %v2233_v2 = vadd.f32 %v1807_v0, %v1291_v1 }
 0x876   : > { %v2236_v3 = vmul.f32 0.70710677, %v2233_v2 }
 0x878   : > { %v1301_v4 = vmul.f32 %v2236_v3, %v2236_v3 }
 0x87a   : > { %v1302_v5 = vmin.f32 %v1301_v4, 16.0 }
 0x87b   : > { %v1294_v6 = vpop.f32.mrf.mxu0 }
 0x87c   : > { %v1303_v8 = vmul.f32 2.1237322e-06, %v1302_v5  ;;  %v1314_v9 = vmul.f32 3.8918573e-05, %v1302_v5  ;;  %v2241_v10 = vadd.f32 %v1807_v0, %v1294_v6 }
 0x87e   : > { %v1304_v12 = vadd.f32 0.00028619796, %v1303_v8  ;;  %v1315_v13 = vadd.f32 0.001143296, %v1314_v9  ;;  %v2245_v14 = vmul.f32 0.70710677, %v2241_v10 }
 0x880   : > { %v1305_v16 = vmul.f32 %v1304_v12, %v1302_v5  ;;  %v1316_v17 = vmul.f32 %v1315_v13, %v1302_v5  ;;  %v1341_v18 = vmul.f32 %v2245_v14, %v2245_v14 }
 0x882   : > { %v1317_v20 = vadd.f32 0.014752088, %v1316_v17  ;;  %v1306_v21 = vadd.f32 0.0036580483, %v1305_v16  ;;  %v1342_v22 = vmin.f32 %v1341_v18, 16.0 }
 0x884   : > { %v1318_v23 = vmul.f32 %v1317_v20, %v1302_v5  ;;  %v1343_v24 = vmul.f32 2.1237322e-06, %v1342_v22  ;;  %v1354_v25 = vmul.f32 3.8918573e-05, %v1342_v22  ;;  %v1307_v28 = vmul.f32 %v1306_v21, %v1302_v5 }
 0x885   : > { %v1297_v21 = vmul.f32 0.5, %v2233_v2 }
 0x886   : > { %v1319_v27 = vadd.f32 0.112945676, %v1318_v23  ;;  %v1344_v29 = vadd.f32 0.00028619796, %v1343_v24  ;;  %v1355_v30 = vadd.f32 0.001143296, %v1354_v25 }
 0x887   : > { %v1308_v37 = vadd.f32 0.05243302, %v1307_v28 }
 0x888   : > { %v1320_v32 = vmul.f32 %v1319_v27, %v1302_v5  ;;  %v1345_v33 = vmul.f32 %v1344_v29, %v1342_v22  ;;  %v1356_v34 = vmul.f32 %v1355_v30, %v1342_v22  ;;  %v1298_v29 = vmul.f32 0.5, %v2241_v10 }
 0x889   : > { %v1309_v43 = vmul.f32 %v1308_v37, %v1302_v5 }
 0x88a   : > { %v1321_v36 = vadd.f32 0.4994258, %v1320_v32  ;;  %v1357_v38 = vadd.f32 0.014752088, %v1356_v34  ;;  %v1346_v40 = vadd.f32 0.0036580483, %v1345_v33 }
 0x88b   : > { %v1310_v47 = vadd.f32 0.18741608, %v1309_v43 }
 0x88c   : > { %v1322_v39 = vmul.f32 %v1321_v36, %v1302_v5  ;;  %v1358_v41 = vmul.f32 %v1357_v38, %v1342_v22  ;;  %v1347_v45 = vmul.f32 %v1346_v40, %v1342_v22 }
 0x88d   : > { %v1311_v52 = vmul.f32 %v1310_v47, %v1302_v5 }
 0x88e   : > { %v1323_v42 = vadd.f32 1.0, %v1322_v39  ;;  %v1359_v44 = vadd.f32 0.112945676, %v1358_v41  ;;  %v1348_v49 = vadd.f32 0.05243302, %v1347_v45 }
 0x88f   : > { %v1312_v61 = vadd.f32 1.1283791, %v1311_v52 }
 0x890   : > { %1833 = vrcp.f32 %v1323_v42  ;;  %v1360_v46 = vmul.f32 %v1359_v44, %v1342_v22  ;;  %v1349_v56 = vmul.f32 %v1348_v49, %v1342_v22  ;;  %v1335_v59 = vand.u32 2147483648, %v1323_v42 }
 0x891   : > { %v1333_v0 = vand.u32 2147483647, %v1323_v42  ;;  %vm1329_vm3 = vweird.f32 %v1323_v42  ;;  %v1313_v8 = vmul.f32 %v1312_v61, %v2236_v3 }
 0x892   : > { %v1361_v48 = vadd.f32 0.4994258, %v1360_v46  ;;  %v1350_v1 = vadd.f32 0.18741608, %v1349_v56  ;;  %v1336_v6 = vor.u32 1.1754944e-38, %v1335_v59 }
 0x893   : > { %vm1334_vm5 = vcmp.eq.f32.partialorder %v1333_v0, 8.507059e+37 }
 0x894   : > { %v1362_v50 = vmul.f32 %v1361_v48, %v1342_v22  ;;  %v1351_v11 = vmul.f32 %v1350_v1, %v1342_v22  ;;  %v1810_v1 = vld [vmem:[%s759_s17] ss:$0 sm:$0xff] }
 0x896   : > { %v1834_v51 = vpop.eup %1833  ;;  %v1363_v55 = vadd.f32 1.0, %v1362_v50  ;;  %v1352_v18 = vadd.f32 1.1283791, %v1351_v11 }
 0x897   : > { %v1325_v54 = vmul.f32 %v1834_v51, %v1323_v42  ;;  %vm1330_vm2 = vweird.f32 %v1834_v51 }
 0x898   : > { %1835 = vrcp.f32 %v1363_v55  ;;  %vm1331_vm4 = vmor %vm1329_vm3, %vm1330_vm2  ;;  %v1375_v17 = vand.u32 2147483648, %v1363_v55  ;;  %v1373_v20 = vand.u32 2147483647, %v1363_v55  ;;  %vm1369_vm7 = vweird.f32 %v1363_v55 }
 0x899   : > { %v1326_v58 = vsub.f32 1.0, %v1325_v54  ;;  %v1353_v22 = vmul.f32 %v1352_v18, %v2245_v14 }
 0x89a   : > { %v1376_v24 = vor.u32 1.1754944e-38, %v1375_v17  ;;  %vm1374_vm11 = vcmp.eq.f32.partialorder %v1373_v20, 8.507059e+37 }
 0x89b   : > { %v1327_v62 = vmul.f32 %v1834_v51, %v1326_v58 }
 0x89d   : > { %v1328_v4 = vadd.f32 %v1834_v51, %v1327_v62  ;;  %v1809_v62 = vld [vmem:[%s756_s23] ss:$0 sm:$0xff]  ;;  %s2372_s23 = sld [smem:[#allocation16_spill]] (!%p1749_p5) }
 0x89e   : > { %v1836_v7 = vpop.eup %1835 }
 0x89f   : > { %v1332_v9 = vsel %vm1331_vm4, %v1834_v51, %v1328_v4  ;;  %v1365_v12 = vmul.f32 %v1836_v7, %v1363_v55  ;;  %vm1370_vm6 = vweird.f32 %v1836_v7 }
 0x8a0   : > { %v1337_v5 = vsel %vm1334_vm5, %v1336_v6, %v1332_v9  ;;  %vm1371_vm10 = vmor %vm1369_vm7, %vm1370_vm6 }
 0x8a1   : > { %v1338_v13 = vmul.f32 %v1337_v5, %v1313_v8  ;;  %v1366_v15 = vsub.f32 1.0, %v1365_v12 }
 0x8a3   : > { %v1745_v16 = vclamps-f32 %v1338_v13, 1.0  ;;  %v1367_v19 = vmul.f32 %v1836_v7, %v1366_v15 }
 0x8a5   : > { %v1381_v60 = vadd.f32 1.0, %v1745_v16  ;;  %v1368_v23 = vadd.f32 %v1836_v7, %v1367_v19 }
 0x8a7   : > { %v1383_v3 = vmul.f32 %v1381_v60, %v1297_v21  ;;  %v1372_v25 = vsel %vm1371_vm10, %v1836_v7, %v1368_v23 }
 0x8a8   : > { %v1377_v26 = vsel %vm1374_vm11, %v1376_v24, %v1372_v25 }
 0x8a9   : > { %1747 = vmatmul.msk.f32.vlgmr.msra.gmra.mxu3 %vm1397_vm9, %v1383_v3  ;;  %v1378_v27 = vmul.f32 %v1377_v26, %v1353_v22 }
 0x8ab   : > { %v1746_v28 = vclamps-f32 %v1378_v27, 1.0 }
 0x8ad   : > { %v1382_v30 = vadd.f32 1.0, %v1746_v28 }
 0x8af   : > { %v1384_v2 = vmul.f32 %v1382_v30, %v1298_v29 }
 0x8b1   : > { %1748 = vmatmul.msk.f32.gmra.mxu3 %vm1397_vm9, %v1384_v2 }
 0x92c   : > { %v1421_v32 = vpop.f32.mrf.mxu3 }
 0x92d   : > { %v1422_v33 = vadd.f32 %v1808_v31, %v1421_v32 }
 0x92f   : > { %v1427_v14 = vadd.f32 %v1422_v33, %v2220_v57 }
 0x931   : > { %v1431_v34 = vsel %vm842_vm8, %v1427_v14, 0.0 }
 0x932   : > { %1432 = vadd.xlane.f32.xlu1 %v1431_v34 }
 0x934   : > { %v1424_v35 = vpop.f32.mrf.mxu3 }
 0x935   : > { %v1425_v36 = vadd.f32 %v1808_v31, %v1424_v35 }
 0x937   : > { %v1428_v37 = vadd.f32 %v1425_v36, %v2224_v63 }
 0x939   : > { %v1434_v10 = vsel %vm842_vm8, %v1428_v37, 0.0 }
 0x93a   : > { %1435 = vadd.xlane.f32.xlu0 %v1434_v10 }
 0x9a5   : > { %v1433_v38 = vpop.xlane.xlu1 %1432 }
 0x9a6   : > { %v1437_v39 = vmul.f32 %v1433_v38, %v2198_v53 }
 0x9a8   : > { %v1439_v40 = vsub.f32 %v1427_v14, %v1437_v39 }
 0x9aa   : > { %v1441_v41 = vmul.f32 %v1439_v40, %v1439_v40 }
 0x9ac   : > { %v1443_v42 = vsel %vm842_vm8, %v1441_v41, 0.0 }
 0x9ad   : > { %1444 = vadd.xlane.f32.xlu2 %v1443_v42  ;;  %v1436_v43 = vpop.xlane.xlu0 %1435 }
 0x9ae   : > { %v1438_v57 = vmul.f32 %v1436_v43, %v2198_v53 }
 0x9b0   : > { %v1440_v44 = vsub.f32 %v1428_v37, %v1438_v57 }
 0x9b2   : > { %v1442_v45 = vmul.f32 %v1440_v44, %v1440_v44 }
 0x9b4   : > { %v1446_v46 = vsel %vm842_vm8, %v1442_v45, 0.0 }
 0x9b5   : > { %1447 = vadd.xlane.f32.xlu1 %v1446_v46 }
 0xa20   : > { %v1445_v63 = vpop.xlane.xlu2 %1444 }
 0xa21   : > { %v1449_v47 = vmul.f32 %v1445_v63, %v2198_v53 }
 0xa23   : > { %v1451_v48 = vadd.f32 1e-12, %v1449_v47 }
 0xa25   : > { %1837 = vrsqrt.f32 %v1451_v48  ;;  %vm1459_vm13 = vweird.f32 %v1451_v48 }
 0xa28   : > { %v1448_v49 = vpop.xlane.xlu1 %1447 }
 0xa29   : > { %v1450_v50 = vmul.f32 %v1448_v49, %v2198_v53 }
 0xa2b   : > { %v1838_v51 = vpop.eup %1837  ;;  %v1452_v54 = vadd.f32 1e-12, %v1450_v50 }
 0xa2c   : > { %v1454_v52 = vmul.f32 %v1838_v51, %v1451_v48  ;;  %vm1460_vm12 = vweird.f32 %v1838_v51 }
 0xa2d   : > { %1839 = vrsqrt.f32 %v1452_v54  ;;  %vm1461_vm14 = vmor %vm1459_vm13, %vm1460_vm12  ;;  %vm1469_vm0 = vweird.f32 %v1452_v54 }
 0xa2e   : > { %v1455_v55 = vmul.f32 %v1838_v51, %v1454_v52 }
 0xa30   : > { %v1456_v56 = vmul.f32 0.5, %v1455_v55 }
 0xa32   : > { %v1457_v58 = vsub.f32 1.5, %v1456_v56 }
 0xa33   : > { %v1840_v59 = vpop.eup %1839 }
 0xa34   : > { %v1458_v61 = vmul.f32 %v1838_v51, %v1457_v58  ;;  %v1464_v0 = vmul.f32 %v1840_v59, %v1452_v54  ;;  %vm1470_vm15 = vweird.f32 %v1840_v59 }
 0xa35   : > { %vm1471_vm1 = vmor %vm1469_vm0, %vm1470_vm15 }
 0xa36   : > { %v1462_v53 = vsel %vm1461_vm14, %v1838_v51, %v1458_v61  ;;  %v1465_v6 = vmul.f32 %v1840_v59, %v1464_v0 }
 0xa37   : > { %v1473_v4 = vmul.f32 %v1462_v53, %v1439_v40 }
 0xa38   : > { %v1466_v8 = vmul.f32 0.5, %v1465_v6 }
 0xa39   : > { %v1478_v7 = vmul.f32 %v1809_v62, %v1473_v4 }
 0xa3a   : > { %v1467_v5 = vsub.f32 1.5, %v1466_v8 }
 0xa3b   : > { %v1483_v9 = vadd.f32 %v1810_v1, %v1478_v7 }
 0xa3c   : > { %v1468_v11 = vmul.f32 %v1840_v59, %v1467_v5 }
 0xa3d   : > { %1485 = vst.msk [vmem:[#allocation2] sm:$0xff] %vm842_vm8, %v1483_v9 }
 0xa3e   : > { %v1472_v12 = vsel %vm1471_vm1, %v1840_v59, %v1468_v11 }
 0xa3f   : > { %v1474_v13 = vmul.f32 %v1472_v12, %v1440_v44 }
 0xa41   : > { %v1479_v15 = vmul.f32 %v1809_v62, %v1474_v13  ;;  %1490 = sbr.rel (%p1749_p5) target bundleno = 2774 (0xad6), region = 100 }
 0xa43   : > { %v1484_v16 = vadd.f32 %v1810_v1, %v1479_v15 }
 0xa45   : > { %1486 = vst.msk [vmem:[#allocation2 + $0x8] sm:$0xff] %vm842_vm8, %v1484_v16 }
 0xa46   : > { %1491 = vst.msk [vmem:[#allocation3] sm:$0xff] %vm842_vm8, %v1483_v9  ;;  %v1501_v17 = vld [vmem:[%s2372_s23 + $0x18] sm:$0xff]  ;;  %v1500_v18 = vld [vmem:[%s2372_s23 + $0x10] sm:$0xff]  ;;  %v1494_v19 = vrot.slane %v1484_v16, 7  ;;  %v1499_v20 = vld [vmem:[%s2372_s23 + $0x8] sm:$0xff]  ;;  %vm1496_vm2 = vcmask 1040384  }
 0xa47   : > { %1492 = vst.msk [vmem:[#allocation3 + $0x8] sm:$0xff] %vm842_vm8, %v1484_v16  ;;  %1521 = vmatpush.msra.mxu0 %v1501_v17  ;;  %v1498_v21 = vld [vmem:[%s2372_s23] sm:$0xff]  ;;  %vm1530_vm3 = vcmask 254976  }
 0xa48   : > { %v1497_v60 = vsel %vm1496_vm2, %v1483_v9, %v1494_v19  ;;  %v1841_v23 = vld [vmem:[%s2373_s26] ss:$0 sm:$0xff] }
 0xa49   : > { %1522 = vmatpush.msra.mxu0 %v1500_v18 }
 0xa4b   : > { %1523 = vmatpush.msra.mxu0 %v1499_v20 }
 0xa4d   : > { %1524 = vmatpush.msra.mxu0 %v1498_v21 }
 0xa4e   : > { %1750 = vmatmul.msk.f32.vlgmr.msra.gmra.mxu0 %vm842_vm8, %v1497_v60 }
 0xacb   : > { %v1526_v3 = vpop.f32.mrf.mxu0 }
 0xacc   : > { %v1527_v24 = vadd.f32 %v1841_v23, %v1526_v3 }
 0xace   : > { %1842 = vtanh.f32 %v1527_v24 }
 0xad4   : > { %v1843_v22 = vpop.eup %1842 }
 0xad5   : > { %1531 = vst.msk [vmem:[#allocation5] sm:$0x3] %vm1530_vm3, %v1843_v22 }
 0xad6 PF: > { %p1769_p6 = scmp.eq.s32.totalorder %s2034_s30, 1  ;;  %s1924_s6 = smov [#allocation3]  }
 0xad7   : > { %s1537_s0 = sshll.u32 %s1924_s6, 4  ;;  %s2374_s29 = sld [smem:[#allocation18_spill]]  ;;  %s1538_s0 = int_to_ptr.vmem [resolvable:$true] %s1537_s0 }
 0xad8   : > { %s1925_s17 = smov 128   ;;  %s1926_s20 = smov 8  }
 0xad9   : > { %s2375_s27 = sld [smem:[#allocation19_spill]]  ;;  %s1927_s19 = smov [#allocation5]  }
 0xada   : > { %s1552_s22 = sshll.u32 %s1927_s19, 4  ;;  %s1553_s22 = int_to_ptr.vmem [resolvable:$true] %s1552_s22 }
 0xadd   : > { %s1539_s25 = sshll.u32 %s2374_s29, 4  ;;  %s1540_s25 = int_to_ptr.hbm [resolvable:$true] %s1539_s25 }
 0xade   : > { %1762 = dma.vmem_to_hbm [thread:$0]  (%p1769_p6), %s1538_s0, 256, %s1540_s25, [#allocation4], %s1925_s17, %s1925_s17, %s1926_s20  }
 0xadf   : > { %s1554_s18 = sshll.u32 %s2375_s27, 4  ;;  %s1555_s18 = int_to_ptr.hbm [resolvable:$true] %s1554_s18 }
 0xae0   : > { %1764 = dma.vmem_to_hbm [thread:$0]  (%p1769_p6), %s1553_s22, 32, %s1555_s18, [#allocation6]  }
 0xae1   : > { %1905 = dma.done.wait (%p1769_p6), [#allocation4], 256  }
 0xae2   : > { %1907 = vsyncadd (%p1769_p6), [#allocation4], 4294967040 }
 0xae3   : > { %1909 = dma.done.wait (%p1769_p6), [#allocation6], 32  }
 0xae4   : > { %1911 = vsyncadd (%p1769_p6), [#allocation6], 4294967264 }
 0xae5 PF: > { %s2376_s24 = sld [smem:[#allocation9_spill]] }
 0xaeb   : > { %s32_s0 = sadd.s32 1, %s2376_s24  }
 0xaec   : > { %p29_p7 = scmp.ge.s32.totalorder %s32_s0, 4  }
 0xaee   :  { %31 = sbr.rel (!%p29_p7) target bundleno = 13 (0xd), region = 168 }
 0xaf3   :  { %1573 = vsyncpa [#allocation4], 1 }
 0xaf4   :  { %1575 = vsyncpa [#allocation4 + $0x1], 1 }
 0xaf5   :  { %1576 = vsyncpa [#allocation6], 1 }

</bundles_post_ra>
